<compile_context>
chip_gen: v5e
topology: v5e:2x2
jax: 0.10.0
libtpu: 0.0.40
codegen_flags: <defaults>
</compile_context>

<pallas_src>
import numpy as np
import jax
import jax.numpy as jnp
from jax import lax
from jax.experimental import pallas as pl
from jax.experimental.pallas import tpu as pltpu

# ----------------------------------------------------------------------------
# Config (mirrors Decoder(n_latent, N_pod, output_channels, encoder_fc_input_dim,
#                         encoder_conv_channels, fc_layers, encoder_spatial_dim_start))
# ----------------------------------------------------------------------------
N_LATENT = 8
FC_LAYERS = [128]
ENC_CONV_CHANNELS = [16, 32, 64]
OUTPUT_CHANNELS = 1
START_SPATIAL = 2                                              # encoder_spatial_dim_start
START_CHANNELS = ENC_CONV_CHANNELS[-1]                         # 64
FC_IN_DIM = START_CHANNELS * START_SPATIAL * START_SPATIAL     # 256
FINAL_SPATIAL = START_SPATIAL * (2 ** len(ENC_CONV_CHANNELS))  # 16
N_POD = FINAL_SPATIAL * FINAL_SPATIAL                          # 256 (perfect square)

# per-conv-layer (H_in, W_in, C_in, C_out)
_CONV_DIMS = []
_s = START_SPATIAL
_src = list(reversed(ENC_CONV_CHANNELS))                                # [64, 32, 16]
_tgt = list(reversed(ENC_CONV_CHANNELS[:-1])) + [OUTPUT_CHANNELS]       # [32, 16, 1]
for _ci, _co in zip(_src, _tgt):
    _CONV_DIMS.append((_s, _s, _ci, _co))
    _s *= 2

assert FINAL_SPATIAL == int(np.sqrt(N_POD)), "bilinear fallback path not implemented"
assert OUTPUT_CHANNELS == 1, "final (B*H, 2W) lane-dense store assumes C_out == 1"

_OUT_ROWS_PER_SAMPLE = _CONV_DIMS[-1][0]                         # 8 rows per sample
_OUT_COLS = 2 * (2 * _CONV_DIMS[-1][1]) * OUTPUT_CHANNELS        # 32 = (dy, x_out, co)


# ----------------------------------------------------------------------------
# Host-side weight preparation (one time, not part of the forward pass)
# ----------------------------------------------------------------------------
# (output phase d, input shift r) -> kernel tap index k of the torch 3x3 weight;
# (d, r) == (0, 1) contributes nothing.
_K_OF = {(0, 0): 1, (1, 0): 2, (1, 1): 0}


def _build_layer_matrix(wt, w_in, c_in, c_out):
    """Map the 4-tap slab rows (tap, x, ci) to output columns ordered (dy, x_out, co).
    wt is the torch ConvTranspose2d weight with layout (C_in, C_out, 3, 3)."""
    cc = w_in * c_in
    no = 2 * (2 * w_in) * c_out
    m = np.zeros((4 * cc, no), np.float32)
    for t, (ry, rx) in enumerate([(0, 0), (0, 1), (1, 0), (1, 1)]):
        for dy in (0, 1):
            ky = _K_OF.get((dy, ry))
            if ky is None:
                continue
            for dx in (0, 1):
                kx = _K_OF.get((dx, rx))
                if kx is None:
                    continue
                for x in range(w_in):
                    xo = 2 * x + dx
                    r0 = t * cc + x * c_in
                    c0 = dy * (2 * w_in * c_out) + xo * c_out
                    m[r0:r0 + c_in, c0:c0 + c_out] = wt[:, :, ky, kx]
    return m
    # NOTE: ~70% structural zeros (banded (dy,dx) pattern).  At W<=8 this costs
    # at most 1-2 extra MXU K-passes; split per dy-phase only if spatial dims grow.


def prepare_params(raw, matmul_dtype=jnp.float32):
    """Convert torch-layout parameters into kernel-ready form (one time, host side).
    MXU-operand matrices are stored in `matmul_dtype` (f32 or bf16); biases stay f32."""
    kp = {"fc1_w": jnp.asarray(raw["fc1_w"], matmul_dtype),
          "fc1_b": jnp.asarray(raw["fc1_b"], jnp.float32)}
    # Fold the `.view(B, C, 2, 2)` NCHW reshape into fc2: reorder its output
    # features from torch (c, y, x) order to (y, x, c).
    s0, c0 = START_SPATIAL, START_CHANNELS
    perm = np.array([c * s0 * s0 + y * s0 + x
                     for y in range(s0) for x in range(s0) for c in range(c0)],
                    np.int32)
    kp["fc2_w"] = jnp.asarray(np.asarray(raw["fc2_w"])[:, perm], matmul_dtype)
    kp["fc2_b"] = jnp.asarray(np.asarray(raw["fc2_b"])[:, perm], jnp.float32)
    for i, (hh, ww, ci, co) in enumerate(_CONV_DIMS):
        wt = np.asarray(raw[f"conv{i}_w_torch"])          # (Ci, Co, 3, 3)
        b = np.asarray(raw[f"conv{i}_b"])                 # (Co,)
        kp[f"conv{i}_W"] = jnp.asarray(_build_layer_matrix(wt, ww, ci, co), matmul_dtype)
        kp[f"conv{i}_b"] = jnp.asarray(np.tile(b, 2 * 2 * ww)[None, :], jnp.float32)
    return kp


# ----------------------------------------------------------------------------
# The single fused Pallas kernel (one batch tile per grid step)
# ----------------------------------------------------------------------------
def _decoder_kernel(z_ref, f1w_ref, f1b_ref, f2w_ref, f2b_ref,
                    w0_ref, b0_ref, w1_ref, b1_ref, w2_ref, b2_ref,
                    o_ref):
    f32 = jnp.float32
    bsz = z_ref.shape[0]

    def mm(x, w):
        # MXU matmul; operands in the weight dtype (f32 or bf16), f32 accumulation.
        return jnp.dot(x.astype(w.dtype), w, preferred_element_type=f32)

    # decoder_fc: Linear + ReLU, Linear + ReLU (fc2 columns pre-permuted to (y, x, c))
    h = mm(z_ref[...], f1w_ref[...]) + f1b_ref[...]
    h = jnp.maximum(h, 0.0)
    h = mm(h, f2w_ref[...]) + f2b_ref[...]
    h = jnp.maximum(h, 0.0)

    # 2-D activation slab: rows = (batch, y), lanes = (x, channel)
    a = h.reshape(bsz * START_SPATIAL, START_SPATIAL * START_CHANNELS)

    w_refs = (w0_ref, w1_ref, w2_ref)
    b_refs = (b0_ref, b1_ref, b2_ref)
    n_layers = len(_CONV_DIMS)
    for li, (hh, ww, ci, co) in enumerate(_CONV_DIMS):
        rows = bsz * hh
        cc = ww * ci                              # per-tap K (= 128 for every layer here)
        w_ref = w_refs[li]

        # four shifted taps of the (implicitly zero-padded) input:
        #   x+1 -> lane-block shift by Ci, zero-fill at x == W-1
        #   y+1 -> sublane shift by 1, zero rows crossing a sample's bottom edge
        zero_col = jnp.zeros((rows, ci), f32)
        zero_row = jnp.zeros((1, cc), f32)
        a01 = jnp.concatenate([a[:, ci:], zero_col], axis=1)
        a_dn = jnp.concatenate([a[1:, :], zero_row], axis=0)
        rid = lax.broadcasted_iota(jnp.int32, (rows, 1), 0)
        keep = ((rid % hh) != (hh - 1)).astype(f32)            # cheap (rows, 1) mask
        a10 = a_dn * keep
        a11 = jnp.concatenate([a10[:, ci:], zero_col], axis=1)

        # K-split accumulation: one K = W*Ci matmul per tap, f32 accumulation
        # (replaces the previous 4-way 512-lane concat + single K=512 matmul).
        y = mm(a, w_ref[0 * cc:1 * cc, :])
        y = y + mm(a01, w_ref[1 * cc:2 * cc, :])
        y = y + mm(a10, w_ref[2 * cc:3 * cc, :])
        y = y + mm(a11, w_ref[3 * cc:4 * cc, :])
        y = y + b_refs[li][...]

        if li < n_layers - 1:
            y = jnp.maximum(y, 0.0)                            # no ReLU after last layer
            # pixel-shuffle the rows: (b, y, dy) -> (b, 2y+dy); pure row-major reshape.
            # TODO(synk): this lane->sublane relayout could be removed by folding the dy
            # interleave into the next layer's tap/weight construction (modest win).
            a = y.reshape(rows * 2, 2 * ww * co)
        else:
            a = y                                              # (B*H_last, 2*2W_last), Co==1

    # Store as (bsz*H_last, 2*W_last); the (B, N_pod) relayout happens in the wrapper
    # (free on a tiny HBM array), keeping it off the kernel's serial critical path.
    o_ref[...] = a


def decoder_forward(latent, kp, *, batch_tile=32):
    """Fused decoder forward.  Weights are DMA'd to VMEM once (constant index_map)
    and stay resident while batch tiles pipeline over a parallel grid axis."""
    B = latent.shape[0]
    n_tiles = -(-B // batch_tile)                       # ceil div (static Python int)
    Bp = n_tiles * batch_tile
    if Bp != B:
        latent = jnp.pad(latent, ((0, Bp - B), (0, 0)))

    w_names = ("fc1_w", "fc1_b", "fc2_w", "fc2_b",
               "conv0_W", "conv0_b", "conv1_W", "conv1_b", "conv2_W", "conv2_b")
    weights = [kp[n] for n in w_names]

    def resident(arr):      # whole array, constant block index -> loaded once, resident
        return pl.BlockSpec(arr.shape, lambda b: (0, 0))

    out = pl.pallas_call(
        _decoder_kernel,
        out_shape=jax.ShapeDtypeStruct((Bp * _OUT_ROWS_PER_SAMPLE, _OUT_COLS), jnp.float32),
        grid=(n_tiles,),
        in_specs=[pl.BlockSpec((batch_tile, N_LATENT), lambda b: (b, 0))]
                 + [resident(w) for w in weights],
        out_specs=pl.BlockSpec((batch_tile * _OUT_ROWS_PER_SAMPLE, _OUT_COLS),
                               lambda b: (b, 0)),
        compiler_params=pltpu.CompilerParams(
            # batch tiles are independent -> both v7x TensorCores take tiles
            dimension_semantics=("parallel",),
            # explicit VMEM budget: ~1.3 MB resident weights + small activation
            # tiles (~4 MB total at batch_tile=32) -- safe on v5e/v6e/v7x
            vmem_limit_bytes=32 * 1024 * 1024),
    )(latent, *weights)

    out = out.reshape(Bp, N_POD)[:B]          # free row-major relayout in the wrapper
    return out.reshape(B, OUTPUT_CHANNELS, N_POD)


# ----------------------------------------------------------------------------
# Deterministic parameter init (torch-layout synthetic weights)
# ----------------------------------------------------------------------------
def init_params(key):
    ks = jax.random.split(key, 4 + 2 * len(_CONV_DIMS))
    p = {}
    p["fc1_w"] = jax.random.normal(ks[0], (N_LATENT, FC_LAYERS[0]), jnp.float32) * 0.2
    p["fc1_b"] = jax.random.normal(ks[1], (1, FC_LAYERS[0]), jnp.float32) * 0.1
    p["fc2_w"] = jax.random.normal(ks[2], (FC_LAYERS[0], FC_IN_DIM), jnp.float32) * 0.1
    p["fc2_b"] = jax.random.normal(ks[3], (1, FC_IN_DIM), jnp.float32) * 0.1
    for i, (hh, ww, ci, co) in enumerate(_CONV_DIMS):
        p[f"conv{i}_w_torch"] = jax.random.normal(ks[4 + 2 * i], (ci, co, 3, 3),
                                                  jnp.float32) * 0.1
        p[f"conv{i}_b"] = jax.random.normal(ks[5 + 2 * i], (co,), jnp.float32) * 0.1
    return p


# ----------------------------------------------------------------------------
# Pure-JAX (XLA conv) reference for validation
# ----------------------------------------------------------------------------
def reference_forward(latent, params):
    B = latent.shape[0]
    hp = lax.Precision.HIGHEST
    h = jnp.maximum(jnp.dot(latent, params["fc1_w"], precision=hp) + params["fc1_b"], 0.0)
    h = jnp.maximum(jnp.dot(h, params["fc2_w"], precision=hp) + params["fc2_b"], 0.0)
    x = h.reshape(B, START_CHANNELS, START_SPATIAL, START_SPATIAL)
    n_layers = len(_CONV_DIMS)
    for i in range(n_layers):
        wt = params[f"conv{i}_w_torch"]                        # (Ci, Co, 3, 3)
        wf = jnp.flip(wt, axis=(2, 3)).transpose(1, 0, 2, 3)   # OIHW, spatially flipped
        x = lax.conv_general_dilated(
            x, wf, window_strides=(1, 1), padding=[(1, 2), (1, 2)],
            lhs_dilation=(2, 2), dimension_numbers=("NCHW", "OIHW", "NCHW"),
            precision=hp)
        x = x + params[f"conv{i}_b"][None, :, None, None]
        if i < n_layers - 1:
            x = jnp.maximum(x, 0.0)
    return x.reshape(B, OUTPUT_CHANNELS, N_POD)


if __name__ == "__main__":
    key = jax.random.PRNGKey(0)
    pkey, dkey_small, dkey_big = jax.random.split(key, 3)
    raw_params = init_params(pkey)
    kp_f32 = prepare_params(raw_params)                               # f32 MXU operands
    kp_bf16 = prepare_params(raw_params, matmul_dtype=jnp.bfloat16)   # bf16 MXU operands

    fwd = jax.jit(decoder_forward, static_argnames=("batch_tile",))

    # Small sanity run (B=2 -> padded to one batch tile of 8).
    z_small = jax.random.normal(dkey_small, (2, N_LATENT), jnp.float32)
    out_small = jax.block_until_ready(fwd(z_small, kp_f32, batch_tile=8))
    assert out_small.shape == (2, OUTPUT_CHANNELS, N_POD), out_small.shape
    ref_small = jax.block_until_ready(reference_forward(z_small, raw_params))
    np.testing.assert_allclose(np.asarray(out_small), np.asarray(ref_small),
                               rtol=1e-3, atol=1e-4)

    # Batched run (B=64 -> 2 parallel grid steps of 32; weights resident across steps).
    z_big = jax.random.normal(dkey_big, (64, N_LATENT), jnp.float32)
    out_big = jax.block_until_ready(fwd(z_big, kp_f32, batch_tile=32))
    ref_big = jax.block_until_ready(reference_forward(z_big, raw_params))
    np.testing.assert_allclose(np.asarray(out_big), np.asarray(ref_big),
                               rtol=1e-3, atol=1e-4)

    # bf16 MXU-operand variant (f32 accumulation) -- validated at a looser tolerance.
    out_bf16 = jax.block_until_ready(fwd(z_big, kp_bf16, batch_tile=32))
    np.testing.assert_allclose(np.asarray(out_bf16), np.asarray(ref_big),
                               rtol=5e-2, atol=5e-2)

    print("KERNEL_OK")
</pallas_src>

<mosaic_0001>
module attributes {stable_mosaic.version = 11 : i64} {
  func.func @_decoder_kernel(%arg0: i32, %arg1: memref<8x8xf32, #tpu.memory_space<vmem>>, %arg2: memref<8x128xf32, #tpu.memory_space<vmem>>, %arg3: memref<1x128xf32, #tpu.memory_space<vmem>>, %arg4: memref<128x256xf32, #tpu.memory_space<vmem>>, %arg5: memref<1x256xf32, #tpu.memory_space<vmem>>, %arg6: memref<512x256xf32, #tpu.memory_space<vmem>>, %arg7: memref<1x256xf32, #tpu.memory_space<vmem>>, %arg8: memref<512x256xf32, #tpu.memory_space<vmem>>, %arg9: memref<1x256xf32, #tpu.memory_space<vmem>>, %arg10: memref<512x32xf32, #tpu.memory_space<vmem>>, %arg11: memref<1x32xf32, #tpu.memory_space<vmem>>, %arg12: memref<64x32xf32, #tpu.memory_space<vmem>>) attributes {dimension_semantics = [#tpu.dimension_semantics<parallel>], iteration_bounds = array<i64: 1>, scalar_prefetch = 0 : i64, scratch_operands = 0 : i64, tpu.core_type = #tpu.core_type<tc>, window_params = [{transform_indices = @transform_0, window_bounds = array<i64: 8, 8>}, {pipeline_mode = #tpu.pipeline_mode<synchronous>, transform_indices = @transform_1, window_bounds = array<i64: 8, 128>}, {pipeline_mode = #tpu.pipeline_mode<synchronous>, transform_indices = @transform_2, window_bounds = array<i64: 1, 128>}, {pipeline_mode = #tpu.pipeline_mode<synchronous>, transform_indices = @transform_3, window_bounds = array<i64: 128, 256>}, {pipeline_mode = #tpu.pipeline_mode<synchronous>, transform_indices = @transform_4, window_bounds = array<i64: 1, 256>}, {pipeline_mode = #tpu.pipeline_mode<synchronous>, transform_indices = @transform_5, window_bounds = array<i64: 512, 256>}, {pipeline_mode = #tpu.pipeline_mode<synchronous>, transform_indices = @transform_6, window_bounds = array<i64: 1, 256>}, {pipeline_mode = #tpu.pipeline_mode<synchronous>, transform_indices = @transform_7, window_bounds = array<i64: 512, 256>}, {pipeline_mode = #tpu.pipeline_mode<synchronous>, transform_indices = @transform_8, window_bounds = array<i64: 1, 256>}, {pipeline_mode = #tpu.pipeline_mode<synchronous>, transform_indices = @transform_9, window_bounds = array<i64: 512, 32>}, {pipeline_mode = #tpu.pipeline_mode<synchronous>, transform_indices = @transform_10, window_bounds = array<i64: 1, 32>}, {transform_indices = @transform_11, window_bounds = array<i64: 64, 32>}]} {
    %c0 = arith.constant 0 : index
    %c0_0 = arith.constant 0 : index
    %0 = vector.load %arg1[%c0, %c0_0] : memref<8x8xf32, #tpu.memory_space<vmem>>, vector<8x8xf32>
    %c0_1 = arith.constant 0 : index
    %c0_2 = arith.constant 0 : index
    %1 = vector.load %arg2[%c0_1, %c0_2] : memref<8x128xf32, #tpu.memory_space<vmem>>, vector<8x128xf32>
    %cst = arith.constant dense<0.000000e+00> : vector<8x128xf32>
    %2 = tpu.matmul %0, %1, %cst {dimension_numbers = #tpu.dot_dimension_numbers<[1], [0], [0], [1], [0, 0, 1, 1], [], []>} : vector<8x8xf32>, vector<8x128xf32>, vector<8x128xf32> -> vector<8x128xf32>
    %c0_3 = arith.constant 0 : index
    %c0_4 = arith.constant 0 : index
    %3 = vector.load %arg3[%c0_3, %c0_4] : memref<1x128xf32, #tpu.memory_space<vmem>>, vector<1x128xf32>
    %4 = vector.broadcast %3 : vector<1x128xf32> to vector<8x128xf32>
    %5 = arith.addf %2, %4 : vector<8x128xf32>
    %cst_5 = arith.constant 0.000000e+00 : f32
    %6 = vector.broadcast %cst_5 : f32 to vector<8x128xf32>
    %7 = arith.maximumf %5, %6 : vector<8x128xf32>
    %c0_6 = arith.constant 0 : index
    %c0_7 = arith.constant 0 : index
    %8 = vector.load %arg4[%c0_6, %c0_7] : memref<128x256xf32, #tpu.memory_space<vmem>>, vector<128x256xf32>
    %cst_8 = arith.constant dense<0.000000e+00> : vector<8x256xf32>
    %9 = tpu.matmul %7, %8, %cst_8 {dimension_numbers = #tpu.dot_dimension_numbers<[1], [0], [0], [1], [0, 0, 1, 1], [], []>} : vector<8x128xf32>, vector<128x256xf32>, vector<8x256xf32> -> vector<8x256xf32>
    %c0_9 = arith.constant 0 : index
    %c0_10 = arith.constant 0 : index
    %10 = vector.load %arg5[%c0_9, %c0_10] : memref<1x256xf32, #tpu.memory_space<vmem>>, vector<1x256xf32>
    %11 = vector.broadcast %10 : vector<1x256xf32> to vector<8x256xf32>
    %12 = arith.addf %9, %11 : vector<8x256xf32>
    %cst_11 = arith.constant 0.000000e+00 : f32
    %13 = vector.broadcast %cst_11 : f32 to vector<8x256xf32>
    %14 = arith.maximumf %12, %13 : vector<8x256xf32>
    %15 = vector.shape_cast %14 : vector<8x256xf32> to vector<16x128xf32>
    %cst_12 = arith.constant 0.000000e+00 : f32
    %16 = vector.broadcast %cst_12 : f32 to vector<16x64xf32>
    %cst_13 = arith.constant 0.000000e+00 : f32
    %17 = vector.broadcast %cst_13 : f32 to vector<1x128xf32>
    %18 = vector.extract_strided_slice %15 {offsets = [0, 64], sizes = [16, 64], strides = [1, 1]} : vector<16x128xf32> to vector<16x64xf32>
    %19 = tpu.concatenate %18, %16 in 1 : vector<16x64xf32>, vector<16x64xf32> -> vector<16x128xf32>
    %20 = vector.extract_strided_slice %15 {offsets = [1, 0], sizes = [15, 128], strides = [1, 1]} : vector<16x128xf32> to vector<15x128xf32>
    %21 = tpu.concatenate %20, %17 in 0 : vector<15x128xf32>, vector<1x128xf32> -> vector<16x128xf32>
    %22 = tpu.iota {dimensions = array<i32: 0>} : vector<16x1xi32>
    %c2_i32 = arith.constant 2 : i32
    %c0_i32 = arith.constant 0 : i32
    %23 = arith.cmpi eq, %c2_i32, %c0_i32 : i32
    %c1_i32 = arith.constant 1 : i32
    %24 = arith.select %23, %c1_i32, %c2_i32 : i32
    %25 = vector.broadcast %24 : i32 to vector<16x1xi32>
    %26 = arith.remsi %22, %25 : vector<16x1xi32>
    %c0_i32_14 = arith.constant 0 : i32
    %27 = vector.broadcast %c0_i32_14 : i32 to vector<16x1xi32>
    %28 = arith.cmpi ne, %26, %27 : vector<16x1xi32>
    %c0_i32_15 = arith.constant 0 : i32
    %29 = vector.broadcast %c0_i32_15 : i32 to vector<16x1xi32>
    %30 = arith.cmpi slt, %26, %29 : vector<16x1xi32>
    %c0_i32_16 = arith.constant 0 : i32
    %31 = arith.cmpi slt, %24, %c0_i32_16 : i32
    %32 = vector.broadcast %31 : i1 to vector<16x1xi1>
    %33 = vector.broadcast %32 : vector<16x1xi1> to vector<16x1xi1>
    %34 = arith.xori %30, %33 : vector<16x1xi1>
    %35 = arith.andi %34, %28 : vector<16x1xi1>
    %36 = vector.broadcast %24 : i32 to vector<16x1xi32>
    %37 = arith.addi %26, %36 : vector<16x1xi32>
    %38 = arith.select %35, %37, %26 : vector<16x1xi1>, vector<16x1xi32>
    %c1_i32_17 = arith.constant 1 : i32
    %39 = vector.broadcast %c1_i32_17 : i32 to vector<16x1xi32>
    %40 = arith.cmpi ne, %38, %39 : vector<16x1xi32>
    %41 = arith.extui %40 : vector<16x1xi1> to vector<16x1xi32>
    %42 = arith.sitofp %41 : vector<16x1xi32> to vector<16x1xf32>
    %43 = vector.broadcast %42 : vector<16x1xf32> to vector<16x128xf32>
    %44 = arith.mulf %21, %43 : vector<16x128xf32>
    %45 = vector.extract_strided_slice %44 {offsets = [0, 64], sizes = [16, 64], strides = [1, 1]} : vector<16x128xf32> to vector<16x64xf32>
    %46 = tpu.concatenate %45, %16 in 1 : vector<16x64xf32>, vector<16x64xf32> -> vector<16x128xf32>
    %c0_18 = arith.constant 0 : index
    %c0_19 = arith.constant 0 : index
    %47 = vector.load %arg6[%c0_18, %c0_19] : memref<512x256xf32, #tpu.memory_space<vmem>>, vector<128x256xf32>
    %cst_20 = arith.constant dense<0.000000e+00> : vector<16x256xf32>
    %48 = tpu.matmul %15, %47, %cst_20 {dimension_numbers = #tpu.dot_dimension_numbers<[1], [0], [0], [1], [0, 0, 1, 1], [], []>} : vector<16x128xf32>, vector<128x256xf32>, vector<16x256xf32> -> vector<16x256xf32>
    %c128 = arith.constant 128 : index
    %c0_21 = arith.constant 0 : index
    %49 = vector.load %arg6[%c128, %c0_21] : memref<512x256xf32, #tpu.memory_space<vmem>>, vector<128x256xf32>
    %cst_22 = arith.constant dense<0.000000e+00> : vector<16x256xf32>
    %50 = tpu.matmul %19, %49, %cst_22 {dimension_numbers = #tpu.dot_dimension_numbers<[1], [0], [0], [1], [0, 0, 1, 1], [], []>} : vector<16x128xf32>, vector<128x256xf32>, vector<16x256xf32> -> vector<16x256xf32>
    %51 = arith.addf %48, %50 : vector<16x256xf32>
    %c256 = arith.constant 256 : index
    %c0_23 = arith.constant 0 : index
    %52 = vector.load %arg6[%c256, %c0_23] : memref<512x256xf32, #tpu.memory_space<vmem>>, vector<128x256xf32>
    %cst_24 = arith.constant dense<0.000000e+00> : vector<16x256xf32>
    %53 = tpu.matmul %44, %52, %cst_24 {dimension_numbers = #tpu.dot_dimension_numbers<[1], [0], [0], [1], [0, 0, 1, 1], [], []>} : vector<16x128xf32>, vector<128x256xf32>, vector<16x256xf32> -> vector<16x256xf32>
    %54 = arith.addf %51, %53 : vector<16x256xf32>
    %c384 = arith.constant 384 : index
    %c0_25 = arith.constant 0 : index
    %55 = vector.load %arg6[%c384, %c0_25] : memref<512x256xf32, #tpu.memory_space<vmem>>, vector<128x256xf32>
    %cst_26 = arith.constant dense<0.000000e+00> : vector<16x256xf32>
    %56 = tpu.matmul %46, %55, %cst_26 {dimension_numbers = #tpu.dot_dimension_numbers<[1], [0], [0], [1], [0, 0, 1, 1], [], []>} : vector<16x128xf32>, vector<128x256xf32>, vector<16x256xf32> -> vector<16x256xf32>
    %57 = arith.addf %54, %56 : vector<16x256xf32>
    %c0_27 = arith.constant 0 : index
    %c0_28 = arith.constant 0 : index
    %58 = vector.load %arg7[%c0_27, %c0_28] : memref<1x256xf32, #tpu.memory_space<vmem>>, vector<1x256xf32>
    %59 = vector.broadcast %58 : vector<1x256xf32> to vector<16x256xf32>
    %60 = arith.addf %57, %59 : vector<16x256xf32>
    %cst_29 = arith.constant 0.000000e+00 : f32
    %61 = vector.broadcast %cst_29 : f32 to vector<16x256xf32>
    %62 = arith.maximumf %60, %61 : vector<16x256xf32>
    %63 = vector.shape_cast %62 : vector<16x256xf32> to vector<32x128xf32>
    %cst_30 = arith.constant 0.000000e+00 : f32
    %64 = vector.broadcast %cst_30 : f32 to vector<32x32xf32>
    %cst_31 = arith.constant 0.000000e+00 : f32
    %65 = vector.broadcast %cst_31 : f32 to vector<1x128xf32>
    %66 = vector.extract_strided_slice %63 {offsets = [0, 32], sizes = [32, 96], strides = [1, 1]} : vector<32x128xf32> to vector<32x96xf32>
    %67 = tpu.concatenate %66, %64 in 1 : vector<32x96xf32>, vector<32x32xf32> -> vector<32x128xf32>
    %68 = vector.extract_strided_slice %63 {offsets = [1, 0], sizes = [31, 128], strides = [1, 1]} : vector<32x128xf32> to vector<31x128xf32>
    %69 = tpu.concatenate %68, %65 in 0 : vector<31x128xf32>, vector<1x128xf32> -> vector<32x128xf32>
    %70 = tpu.iota {dimensions = array<i32: 0>} : vector<32x1xi32>
    %c4_i32 = arith.constant 4 : i32
    %c0_i32_32 = arith.constant 0 : i32
    %71 = arith.cmpi eq, %c4_i32, %c0_i32_32 : i32
    %c1_i32_33 = arith.constant 1 : i32
    %72 = arith.select %71, %c1_i32_33, %c4_i32 : i32
    %73 = vector.broadcast %72 : i32 to vector<32x1xi32>
    %74 = arith.remsi %70, %73 : vector<32x1xi32>
    %c0_i32_34 = arith.constant 0 : i32
    %75 = vector.broadcast %c0_i32_34 : i32 to vector<32x1xi32>
    %76 = arith.cmpi ne, %74, %75 : vector<32x1xi32>
    %c0_i32_35 = arith.constant 0 : i32
    %77 = vector.broadcast %c0_i32_35 : i32 to vector<32x1xi32>
    %78 = arith.cmpi slt, %74, %77 : vector<32x1xi32>
    %c0_i32_36 = arith.constant 0 : i32
    %79 = arith.cmpi slt, %72, %c0_i32_36 : i32
    %80 = vector.broadcast %79 : i1 to vector<32x1xi1>
    %81 = vector.broadcast %80 : vector<32x1xi1> to vector<32x1xi1>
    %82 = arith.xori %78, %81 : vector<32x1xi1>
    %83 = arith.andi %82, %76 : vector<32x1xi1>
    %84 = vector.broadcast %72 : i32 to vector<32x1xi32>
    %85 = arith.addi %74, %84 : vector<32x1xi32>
    %86 = arith.select %83, %85, %74 : vector<32x1xi1>, vector<32x1xi32>
    %c3_i32 = arith.constant 3 : i32
    %87 = vector.broadcast %c3_i32 : i32 to vector<32x1xi32>
    %88 = arith.cmpi ne, %86, %87 : vector<32x1xi32>
    %89 = arith.extui %88 : vector<32x1xi1> to vector<32x1xi32>
    %90 = arith.sitofp %89 : vector<32x1xi32> to vector<32x1xf32>
    %91 = vector.broadcast %90 : vector<32x1xf32> to vector<32x128xf32>
    %92 = arith.mulf %69, %91 : vector<32x128xf32>
    %93 = vector.extract_strided_slice %92 {offsets = [0, 32], sizes = [32, 96], strides = [1, 1]} : vector<32x128xf32> to vector<32x96xf32>
    %94 = tpu.concatenate %93, %64 in 1 : vector<32x96xf32>, vector<32x32xf32> -> vector<32x128xf32>
    %c0_37 = arith.constant 0 : index
    %c0_38 = arith.constant 0 : index
    %95 = vector.load %arg8[%c0_37, %c0_38] : memref<512x256xf32, #tpu.memory_space<vmem>>, vector<128x256xf32>
    %cst_39 = arith.constant dense<0.000000e+00> : vector<32x256xf32>
    %96 = tpu.matmul %63, %95, %cst_39 {dimension_numbers = #tpu.dot_dimension_numbers<[1], [0], [0], [1], [0, 0, 1, 1], [], []>} : vector<32x128xf32>, vector<128x256xf32>, vector<32x256xf32> -> vector<32x256xf32>
    %c128_40 = arith.constant 128 : index
    %c0_41 = arith.constant 0 : index
    %97 = vector.load %arg8[%c128_40, %c0_41] : memref<512x256xf32, #tpu.memory_space<vmem>>, vector<128x256xf32>
    %cst_42 = arith.constant dense<0.000000e+00> : vector<32x256xf32>
    %98 = tpu.matmul %67, %97, %cst_42 {dimension_numbers = #tpu.dot_dimension_numbers<[1], [0], [0], [1], [0, 0, 1, 1], [], []>} : vector<32x128xf32>, vector<128x256xf32>, vector<32x256xf32> -> vector<32x256xf32>
    %99 = arith.addf %96, %98 : vector<32x256xf32>
    %c256_43 = arith.constant 256 : index
    %c0_44 = arith.constant 0 : index
    %100 = vector.load %arg8[%c256_43, %c0_44] : memref<512x256xf32, #tpu.memory_space<vmem>>, vector<128x256xf32>
    %cst_45 = arith.constant dense<0.000000e+00> : vector<32x256xf32>
    %101 = tpu.matmul %92, %100, %cst_45 {dimension_numbers = #tpu.dot_dimension_numbers<[1], [0], [0], [1], [0, 0, 1, 1], [], []>} : vector<32x128xf32>, vector<128x256xf32>, vector<32x256xf32> -> vector<32x256xf32>
    %102 = arith.addf %99, %101 : vector<32x256xf32>
    %c384_46 = arith.constant 384 : index
    %c0_47 = arith.constant 0 : index
    %103 = vector.load %arg8[%c384_46, %c0_47] : memref<512x256xf32, #tpu.memory_space<vmem>>, vector<128x256xf32>
    %cst_48 = arith.constant dense<0.000000e+00> : vector<32x256xf32>
    %104 = tpu.matmul %94, %103, %cst_48 {dimension_numbers = #tpu.dot_dimension_numbers<[1], [0], [0], [1], [0, 0, 1, 1], [], []>} : vector<32x128xf32>, vector<128x256xf32>, vector<32x256xf32> -> vector<32x256xf32>
    %105 = arith.addf %102, %104 : vector<32x256xf32>
    %c0_49 = arith.constant 0 : index
    %c0_50 = arith.constant 0 : index
    %106 = vector.load %arg9[%c0_49, %c0_50] : memref<1x256xf32, #tpu.memory_space<vmem>>, vector<1x256xf32>
    %107 = vector.broadcast %106 : vector<1x256xf32> to vector<32x256xf32>
    %108 = arith.addf %105, %107 : vector<32x256xf32>
    %cst_51 = arith.constant 0.000000e+00 : f32
    %109 = vector.broadcast %cst_51 : f32 to vector<32x256xf32>
    %110 = arith.maximumf %108, %109 : vector<32x256xf32>
    %111 = vector.shape_cast %110 : vector<32x256xf32> to vector<64x128xf32>
    %cst_52 = arith.constant 0.000000e+00 : f32
    %112 = vector.broadcast %cst_52 : f32 to vector<64x16xf32>
    %cst_53 = arith.constant 0.000000e+00 : f32
    %113 = vector.broadcast %cst_53 : f32 to vector<1x128xf32>
    %114 = vector.extract_strided_slice %111 {offsets = [0, 16], sizes = [64, 112], strides = [1, 1]} : vector<64x128xf32> to vector<64x112xf32>
    %115 = tpu.concatenate %114, %112 in 1 : vector<64x112xf32>, vector<64x16xf32> -> vector<64x128xf32>
    %116 = vector.extract_strided_slice %111 {offsets = [1, 0], sizes = [63, 128], strides = [1, 1]} : vector<64x128xf32> to vector<63x128xf32>
    %117 = tpu.concatenate %116, %113 in 0 : vector<63x128xf32>, vector<1x128xf32> -> vector<64x128xf32>
    %118 = tpu.iota {dimensions = array<i32: 0>} : vector<64x1xi32>
    %c8_i32 = arith.constant 8 : i32
    %c0_i32_54 = arith.constant 0 : i32
    %119 = arith.cmpi eq, %c8_i32, %c0_i32_54 : i32
    %c1_i32_55 = arith.constant 1 : i32
    %120 = arith.select %119, %c1_i32_55, %c8_i32 : i32
    %121 = vector.broadcast %120 : i32 to vector<64x1xi32>
    %122 = arith.remsi %118, %121 : vector<64x1xi32>
    %c0_i32_56 = arith.constant 0 : i32
    %123 = vector.broadcast %c0_i32_56 : i32 to vector<64x1xi32>
    %124 = arith.cmpi ne, %122, %123 : vector<64x1xi32>
    %c0_i32_57 = arith.constant 0 : i32
    %125 = vector.broadcast %c0_i32_57 : i32 to vector<64x1xi32>
    %126 = arith.cmpi slt, %122, %125 : vector<64x1xi32>
    %c0_i32_58 = arith.constant 0 : i32
    %127 = arith.cmpi slt, %120, %c0_i32_58 : i32
    %128 = vector.broadcast %127 : i1 to vector<64x1xi1>
    %129 = vector.broadcast %128 : vector<64x1xi1> to vector<64x1xi1>
    %130 = arith.xori %126, %129 : vector<64x1xi1>
    %131 = arith.andi %130, %124 : vector<64x1xi1>
    %132 = vector.broadcast %120 : i32 to vector<64x1xi32>
    %133 = arith.addi %122, %132 : vector<64x1xi32>
    %134 = arith.select %131, %133, %122 : vector<64x1xi1>, vector<64x1xi32>
    %c7_i32 = arith.constant 7 : i32
    %135 = vector.broadcast %c7_i32 : i32 to vector<64x1xi32>
    %136 = arith.cmpi ne, %134, %135 : vector<64x1xi32>
    %137 = arith.extui %136 : vector<64x1xi1> to vector<64x1xi32>
    %138 = arith.sitofp %137 : vector<64x1xi32> to vector<64x1xf32>
    %139 = vector.broadcast %138 : vector<64x1xf32> to vector<64x128xf32>
    %140 = arith.mulf %117, %139 : vector<64x128xf32>
    %141 = vector.extract_strided_slice %140 {offsets = [0, 16], sizes = [64, 112], strides = [1, 1]} : vector<64x128xf32> to vector<64x112xf32>
    %142 = tpu.concatenate %141, %112 in 1 : vector<64x112xf32>, vector<64x16xf32> -> vector<64x128xf32>
    %c0_59 = arith.constant 0 : index
    %c0_60 = arith.constant 0 : index
    %143 = vector.load %arg10[%c0_59, %c0_60] : memref<512x32xf32, #tpu.memory_space<vmem>>, vector<128x32xf32>
    %cst_61 = arith.constant dense<0.000000e+00> : vector<64x32xf32>
    %144 = tpu.matmul %111, %143, %cst_61 {dimension_numbers = #tpu.dot_dimension_numbers<[1], [0], [0], [1], [0, 0, 1, 1], [], []>} : vector<64x128xf32>, vector<128x32xf32>, vector<64x32xf32> -> vector<64x32xf32>
    %c128_62 = arith.constant 128 : index
    %c0_63 = arith.constant 0 : index
    %145 = vector.load %arg10[%c128_62, %c0_63] : memref<512x32xf32, #tpu.memory_space<vmem>>, vector<128x32xf32>
    %cst_64 = arith.constant dense<0.000000e+00> : vector<64x32xf32>
    %146 = tpu.matmul %115, %145, %cst_64 {dimension_numbers = #tpu.dot_dimension_numbers<[1], [0], [0], [1], [0, 0, 1, 1], [], []>} : vector<64x128xf32>, vector<128x32xf32>, vector<64x32xf32> -> vector<64x32xf32>
    %147 = arith.addf %144, %146 : vector<64x32xf32>
    %c256_65 = arith.constant 256 : index
    %c0_66 = arith.constant 0 : index
    %148 = vector.load %arg10[%c256_65, %c0_66] : memref<512x32xf32, #tpu.memory_space<vmem>>, vector<128x32xf32>
    %cst_67 = arith.constant dense<0.000000e+00> : vector<64x32xf32>
    %149 = tpu.matmul %140, %148, %cst_67 {dimension_numbers = #tpu.dot_dimension_numbers<[1], [0], [0], [1], [0, 0, 1, 1], [], []>} : vector<64x128xf32>, vector<128x32xf32>, vector<64x32xf32> -> vector<64x32xf32>
    %150 = arith.addf %147, %149 : vector<64x32xf32>
    %c384_68 = arith.constant 384 : index
    %c0_69 = arith.constant 0 : index
    %151 = vector.load %arg10[%c384_68, %c0_69] : memref<512x32xf32, #tpu.memory_space<vmem>>, vector<128x32xf32>
    %cst_70 = arith.constant dense<0.000000e+00> : vector<64x32xf32>
    %152 = tpu.matmul %142, %151, %cst_70 {dimension_numbers = #tpu.dot_dimension_numbers<[1], [0], [0], [1], [0, 0, 1, 1], [], []>} : vector<64x128xf32>, vector<128x32xf32>, vector<64x32xf32> -> vector<64x32xf32>
    %153 = arith.addf %150, %152 : vector<64x32xf32>
    %c0_71 = arith.constant 0 : index
    %c0_72 = arith.constant 0 : index
    %154 = vector.load %arg11[%c0_71, %c0_72] : memref<1x32xf32, #tpu.memory_space<vmem>>, vector<1x32xf32>
    %155 = vector.broadcast %154 : vector<1x32xf32> to vector<64x32xf32>
    %156 = arith.addf %153, %155 : vector<64x32xf32>
    %c0_73 = arith.constant 0 : index
    %c0_74 = arith.constant 0 : index
    %157 = vector.load %arg12[%c0_73, %c0_74] : memref<64x32xf32, #tpu.memory_space<vmem>>, vector<64x32xf32>
    tpu.vector_store %arg12[%c0_73, %c0_74], %156 {strides = array<i32>} : memref<64x32xf32, #tpu.memory_space<vmem>>, vector<64x32xf32>,
    return
  }
  func.func @transform_0(%arg0: i32) -> (i32, i32) {
    %c0_i32 = arith.constant 0 : i32
    %c0_i32_0 = arith.constant 0 : i32
    return %arg0, %c0_i32 : i32, i32
  }
  func.func @transform_1(%arg0: i32) -> (i32, i32) {
    %c0_i32 = arith.constant 0 : i32
    %c0_i32_0 = arith.constant 0 : i32
    %c0_i32_1 = arith.constant 0 : i32
    return %c0_i32, %c0_i32_0 : i32, i32
  }
  func.func @transform_2(%arg0: i32) -> (i32, i32) {
    %c0_i32 = arith.constant 0 : i32
    %c0_i32_0 = arith.constant 0 : i32
    %c0_i32_1 = arith.constant 0 : i32
    return %c0_i32, %c0_i32_0 : i32, i32
  }
  func.func @transform_3(%arg0: i32) -> (i32, i32) {
    %c0_i32 = arith.constant 0 : i32
    %c0_i32_0 = arith.constant 0 : i32
    %c0_i32_1 = arith.constant 0 : i32
    return %c0_i32, %c0_i32_0 : i32, i32
  }
  func.func @transform_4(%arg0: i32) -> (i32, i32) {
    %c0_i32 = arith.constant 0 : i32
    %c0_i32_0 = arith.constant 0 : i32
    %c0_i32_1 = arith.constant 0 : i32
    return %c0_i32, %c0_i32_0 : i32, i32
  }
  func.func @transform_5(%arg0: i32) -> (i32, i32) {
    %c0_i32 = arith.constant 0 : i32
    %c0_i32_0 = arith.constant 0 : i32
    %c0_i32_1 = arith.constant 0 : i32
    return %c0_i32, %c0_i32_0 : i32, i32
  }
  func.func @transform_6(%arg0: i32) -> (i32, i32) {
    %c0_i32 = arith.constant 0 : i32
    %c0_i32_0 = arith.constant 0 : i32
    %c0_i32_1 = arith.constant 0 : i32
    return %c0_i32, %c0_i32_0 : i32, i32
  }
  func.func @transform_7(%arg0: i32) -> (i32, i32) {
    %c0_i32 = arith.constant 0 : i32
    %c0_i32_0 = arith.constant 0 : i32
    %c0_i32_1 = arith.constant 0 : i32
    return %c0_i32, %c0_i32_0 : i32, i32
  }
  func.func @transform_8(%arg0: i32) -> (i32, i32) {
    %c0_i32 = arith.constant 0 : i32
    %c0_i32_0 = arith.constant 0 : i32
    %c0_i32_1 = arith.constant 0 : i32
    return %c0_i32, %c0_i32_0 : i32, i32
  }
  func.func @transform_9(%arg0: i32) -> (i32, i32) {
    %c0_i32 = arith.constant 0 : i32
    %c0_i32_0 = arith.constant 0 : i32
    %c0_i32_1 = arith.constant 0 : i32
    return %c0_i32, %c0_i32_0 : i32, i32
  }
  func.func @transform_10(%arg0: i32) -> (i32, i32) {
    %c0_i32 = arith.constant 0 : i32
    %c0_i32_0 = arith.constant 0 : i32
    %c0_i32_1 = arith.constant 0 : i32
    return %c0_i32, %c0_i32_0 : i32, i32
  }
  func.func @transform_11(%arg0: i32) -> (i32, i32) {
    %c0_i32 = arith.constant 0 : i32
    %c0_i32_0 = arith.constant 0 : i32
    return %arg0, %c0_i32 : i32, i32
  }
}

</mosaic_0001>

<bundles_post_ra>
// kernel: decoder_forward.1
= control target key start
LH: loop header
LB: loop body
LE: loop exit
PB: predicated region body
PF: predicated region fallthrough
CT: control target
= control target key end

     0   :  { %16 = vsyncpa [#allocation3], 0  ;;  %s2639_s0 = inlined_call_operand.vmem [shape: f32[8,8], index: 0, kind: input, shape index: {}]   ;;  %s2640_s1 = inlined_call_operand.vmem [shape: f32[8,128], index: 1, kind: input, shape index: {}]   ;;  %s2641_s2 = inlined_call_operand.vmem [shape: f32[1,128], index: 2, kind: input, shape index: {}]   ;;  %s2642_s3 = inlined_call_operand.vmem [shape: f32[128,256], index: 3, kind: input, shape index: {}]   ;;  %s2643_s4 = inlined_call_operand.vmem [shape: f32[1,256], index: 4, kind: input, shape index: {}]   ;;  %s2644_s5 = inlined_call_operand.hbm [shape: f32[512,256], index: 5, kind: input, shape index: {}]   ;;  %s2645_s6 = inlined_call_operand.vmem [shape: f32[1,256], index: 6, kind: input, shape index: {}]   ;;  %s2646_s7 = inlined_call_operand.hbm [shape: f32[512,256], index: 7, kind: input, shape index: {}]   ;;  %s2647_s8 = inlined_call_operand.vmem [shape: f32[1,256], index: 8, kind: input, shape index: {}]   ;;  %s2648_s9 = inlined_call_operand.vmem [shape: f32[512,32], index: 9, kind: input, shape index: {}]   ;;  %s2649_s10 = inlined_call_operand.vmem [shape: f32[1,32], index: 10, kind: input, shape index: {}]   ;;  %s2650_s11 = inlined_call_operand.vmem [shape: f32[64,32], index: 11, kind: output, shape index: {}]  }
   0x1   :  { %s32_s19 = sshll.u32 %s2644_s5, 4  ;;  %s33_s19 = int_to_ptr.hbm [resolvable:$true] %s32_s19 }
   0x2   :  { %17 = vsyncpa [#allocation5], 0  ;;  %s1866_s20 = smov [#allocation2]   ;;  %s47_s24 = sshll.u32 %s2646_s7, 4  ;;  %s48_s24 = int_to_ptr.hbm [resolvable:$true] %s47_s24 }
   0x3   :  { %s34_s21 = sshll.u32 %s1866_s20, 4  ;;  %s1867_s25 = smov 256   ;;  %s35_s21 = int_to_ptr.vmem [resolvable:$true] %s34_s21 }
   0x4   :  { %s1868_s26 = smov 16   ;;  %s1869_s27 = smov [#allocation4]  }
   0x5   :  { %40 = dma.hbm_to_vmem [thread:$0]  %s33_s19, 16384, %s35_s21, [#allocation3], %s1867_s25, %s1867_s25, %s1868_s26  }
   0x6   :  { %s49_s28 = sshll.u32 %s1869_s27, 4  ;;  %s50_s28 = int_to_ptr.vmem [resolvable:$true] %s49_s28 }
   0x7   :  { %55 = dma.hbm_to_vmem [thread:$0]  %s48_s24, 16384, %s50_s28, [#allocation5], %s1867_s25, %s1867_s25, %s1868_s26  }
   0x8   :  { %1862 = dma.done.wait [#allocation3], 16384  }
   0x9   :  { %1863 = vsyncadd [#allocation3], 4294950912 }
   0xa   :  { %1864 = dma.done.wait [#allocation5], 16384  }
   0xb   :  { %1865 = vsyncadd [#allocation5], 4294950912  ;;  %vm76_vm0 = vcmask 64512   ;;  %v71_v0 = vld [vmem:[%s2640_s1] sm:$0xff]  ;;  %v131_v2 = vld [vmem:[%s2642_s3 + $0xf0] sm:$0xff]  ;;  %vm184_vm1 = vcmask 1043456  }
   0xc   :  { %v70_v1 = vld [vmem:[%s2639_s0] sm:$0xff]  ;;  %95 = vmatpush.msra.mxu0 %v71_v0  ;;  %139 = vmatpush.msra.mxu1 %v131_v2  ;;  %v132_v3 = vld [vmem:[%s2642_s3 + $0xf8] sm:$0xff]  ;;  %v130_v5 = vld [vmem:[%s2642_s3 + $0xe8] sm:$0xff]  ;;  %vm209_vm3 = vcmask 1046528   ;;  %vm206_vm5 = vcmask 523264   ;;  %vm643_vm10 = vcmask 785408  }
   0xd   :  { %v129_v4 = vld [vmem:[%s2642_s3 + $0xe0] sm:$0xff]  ;;  %1716 = vmatmul.msk.f32.vlgmr.msra.gmra.mxu0 %vm76_vm0, %v70_v1  ;;  %159 = vmatpush.msra.mxu2 %v132_v3  ;;  %v127_v6 = vld [vmem:[%s2642_s3 + $0xd0] sm:$0xff]  ;;  %v128_v7 = vld [vmem:[%s2642_s3 + $0xd8] sm:$0xff] }
   0xe   :  { %140 = vmatpush.msra.mxu1 %v129_v4  ;;  %v125_v8 = vld [vmem:[%s2642_s3 + $0xc0] sm:$0xff]  ;;  %v126_v9 = vld [vmem:[%s2642_s3 + $0xc8] sm:$0xff]  ;;  %v123_v10 = vld [vmem:[%s2642_s3 + $0xb0] sm:$0xff] }
   0xf   :  { %160 = vmatpush.msra.mxu2 %v130_v5  ;;  %v124_v11 = vld [vmem:[%s2642_s3 + $0xb8] sm:$0xff]  ;;  %v121_v12 = vld [vmem:[%s2642_s3 + $0xa0] sm:$0xff]  ;;  %v122_v13 = vld [vmem:[%s2642_s3 + $0xa8] sm:$0xff] }
  0x10   :  { %141 = vmatpush.msra.mxu1 %v127_v6  ;;  %v119_v14 = vld [vmem:[%s2642_s3 + $0x90] sm:$0xff]  ;;  %v120_v15 = vld [vmem:[%s2642_s3 + $0x98] sm:$0xff]  ;;  %v117_v16 = vld [vmem:[%s2642_s3 + $0x80] sm:$0xff] }
  0x11   :  { %161 = vmatpush.msra.mxu2 %v128_v7  ;;  %v118_v17 = vld [vmem:[%s2642_s3 + $0x88] sm:$0xff]  ;;  %v115_v18 = vld [vmem:[%s2642_s3 + $0x70] sm:$0xff]  ;;  %v116_v19 = vld [vmem:[%s2642_s3 + $0x78] sm:$0xff] }
  0x12   :  { %142 = vmatpush.msra.mxu1 %v125_v8  ;;  %v113_v20 = vld [vmem:[%s2642_s3 + $0x60] sm:$0xff]  ;;  %v114_v21 = vld [vmem:[%s2642_s3 + $0x68] sm:$0xff]  ;;  %v111_v22 = vld [vmem:[%s2642_s3 + $0x50] sm:$0xff] }
  0x13   :  { %162 = vmatpush.msra.mxu2 %v126_v9  ;;  %v112_v23 = vld [vmem:[%s2642_s3 + $0x58] sm:$0xff]  ;;  %v109_v24 = vld [vmem:[%s2642_s3 + $0x40] sm:$0xff]  ;;  %v110_v25 = vld [vmem:[%s2642_s3 + $0x48] sm:$0xff] }
  0x14   :  { %143 = vmatpush.msra.mxu1 %v123_v10  ;;  %v107_v26 = vld [vmem:[%s2642_s3 + $0x30] sm:$0xff]  ;;  %v108_v27 = vld [vmem:[%s2642_s3 + $0x38] sm:$0xff]  ;;  %v105_v28 = vld [vmem:[%s2642_s3 + $0x20] sm:$0xff] }
  0x15   :  { %163 = vmatpush.msra.mxu2 %v124_v11  ;;  %v106_v29 = vld [vmem:[%s2642_s3 + $0x28] sm:$0xff]  ;;  %v103_v30 = vld [vmem:[%s2642_s3 + $0x10] sm:$0xff]  ;;  %v104_v31 = vld [vmem:[%s2642_s3 + $0x18] sm:$0xff] }
  0x16   :  { %144 = vmatpush.msra.mxu1 %v121_v12  ;;  %v101_v32 = vld [vmem:[%s2642_s3] sm:$0xff]  ;;  %v102_v33 = vld [vmem:[%s2642_s3 + $0x8] sm:$0xff]  ;;  %v291_v34 = vld [vmem:[#allocation2 + $0xf0] sm:$0xff] }
  0x17   :  { %164 = vmatpush.msra.mxu2 %v122_v13  ;;  %v292_v35 = vld [vmem:[#allocation2 + $0xf8] sm:$0xff]  ;;  %v289_v36 = vld [vmem:[#allocation2 + $0xe0] sm:$0xff]  ;;  %v290_v37 = vld [vmem:[#allocation2 + $0xe8] sm:$0xff] }
  0x18   :  { %145 = vmatpush.msra.mxu1 %v119_v14  ;;  %v287_v38 = vld [vmem:[#allocation2 + $0xd0] sm:$0xff]  ;;  %v288_v39 = vld [vmem:[#allocation2 + $0xd8] sm:$0xff]  ;;  %v285_v40 = vld [vmem:[#allocation2 + $0xc0] sm:$0xff] }
  0x19   :  { %165 = vmatpush.msra.mxu2 %v120_v15  ;;  %v286_v41 = vld [vmem:[#allocation2 + $0xc8] sm:$0xff]  ;;  %v283_v42 = vld [vmem:[#allocation2 + $0xb0] sm:$0xff]  ;;  %v284_v43 = vld [vmem:[#allocation2 + $0xb8] sm:$0xff] }
  0x1a   :  { %146 = vmatpush.msra.mxu1 %v117_v16  ;;  %v281_v44 = vld [vmem:[#allocation2 + $0xa0] sm:$0xff]  ;;  %v282_v45 = vld [vmem:[#allocation2 + $0xa8] sm:$0xff]  ;;  %v279_v46 = vld [vmem:[#allocation2 + $0x90] sm:$0xff] }
  0x1b   :  { %166 = vmatpush.msra.mxu2 %v118_v17  ;;  %v280_v47 = vld [vmem:[#allocation2 + $0x98] sm:$0xff]  ;;  %v277_v48 = vld [vmem:[#allocation2 + $0x80] sm:$0xff]  ;;  %v278_v49 = vld [vmem:[#allocation2 + $0x88] sm:$0xff] }
  0x1c   :  { %147 = vmatpush.msra.mxu1 %v115_v18  ;;  %v1812_v50 = vld [vmem:[%s2641_s2] ss:$0 sm:$0xff]  ;;  %v275_v54 = vld [vmem:[#allocation2 + $0x70] sm:$0xff]  ;;  %v276_v55 = vld [vmem:[#allocation2 + $0x78] sm:$0xff]  ;;  %v216_v18 = vlaneseq }
  0x1d   :  { %167 = vmatpush.msra.mxu2 %v116_v19  ;;  %v273_v56 = vld [vmem:[#allocation2 + $0x60] sm:$0xff]  ;;  %v274_v57 = vld [vmem:[#allocation2 + $0x68] sm:$0xff]  ;;  %v271_v58 = vld [vmem:[#allocation2 + $0x50] sm:$0xff] }
  0x1e   :  { %148 = vmatpush.msra.mxu1 %v113_v20  ;;  %v272_v59 = vld [vmem:[#allocation2 + $0x58] sm:$0xff]  ;;  %v269_v60 = vld [vmem:[#allocation2 + $0x40] sm:$0xff]  ;;  %v270_v61 = vld [vmem:[#allocation2 + $0x48] sm:$0xff] }
  0x1f   :  { %168 = vmatpush.msra.mxu2 %v114_v21  ;;  %v267_v62 = vld [vmem:[#allocation2 + $0x30] sm:$0xff]  ;;  %v268_v63 = vld [vmem:[#allocation2 + $0x38] sm:$0xff]  ;;  %v265_v0 = vld [vmem:[#allocation2 + $0x20] sm:$0xff] }
  0x20   :  { %149 = vmatpush.msra.mxu1 %v111_v22  ;;  %v266_v1 = vld [vmem:[#allocation2 + $0x28] sm:$0xff]  ;;  %v263_v2 = vld [vmem:[#allocation2 + $0x10] sm:$0xff]  ;;  %v264_v3 = vld [vmem:[#allocation2 + $0x18] sm:$0xff]  ;;  %v1870_v22 = vmov 1935823168  }
  0x21   :  { %169 = vmatpush.msra.mxu2 %v112_v23  ;;  %v261_v4 = vld [vmem:[#allocation2] sm:$0xff]  ;;  %v262_v5 = vld [vmem:[#allocation2 + $0x8] sm:$0xff]  ;;  %v323_v6 = vld [vmem:[#allocation2 + $0x1f0] sm:$0xff]  ;;  %v191_v23 = vunpack.c.l.s4 %v1870_v22 }
  0x22   :  { %150 = vmatpush.msra.mxu1 %v109_v24  ;;  %v324_v7 = vld [vmem:[#allocation2 + $0x1f8] sm:$0xff]  ;;  %v321_v8 = vld [vmem:[#allocation2 + $0x1e0] sm:$0xff]  ;;  %325 = vmatpush.msra.mxu3 %v323_v6  ;;  %v322_v10 = vld [vmem:[#allocation2 + $0x1e8] sm:$0xff] }
  0x23   :  { %170 = vmatpush.msra.mxu2 %v110_v25  ;;  %v133_v9 = vld [vmem:[%s2643_s4] sm:$0x3]  ;;  %348 = vmatpush.msrb.mxu0 %v324_v7  ;;  %v319_v11 = vld [vmem:[#allocation2 + $0x1d0] sm:$0xff]  ;;  %v320_v12 = vld [vmem:[#allocation2 + $0x1d8] sm:$0xff]  ;;  %s1871_s4 = smov 64  }
  0x24   :  { %151 = vmatpush.msra.mxu1 %v107_v26  ;;  %326 = vmatpush.msra.mxu3 %v321_v8  ;;  %v135_v13 = vperm.slane %v133_v9, 0  ;;  %v136_v14 = vperm.slane %v133_v9, 1  ;;  %v317_v15 = vld [vmem:[#allocation2 + $0x1c0] sm:$0xff]  ;;  %v318_v16 = vld [vmem:[#allocation2 + $0x1c8] sm:$0xff]  ;;  %v315_v19 = vld [vmem:[#allocation2 + $0x1b0] sm:$0xff] }
  0x25   :  { %171 = vmatpush.msra.mxu2 %v108_v27  ;;  %349 = vmatpush.msrb.mxu0 %v322_v10  ;;  %v316_v20 = vld [vmem:[#allocation2 + $0x1b8] sm:$0xff]  ;;  %v313_v24 = vld [vmem:[#allocation2 + $0x1a0] sm:$0xff]  ;;  %v314_v27 = vld [vmem:[#allocation2 + $0x1a8] sm:$0xff] }
  0x26   :  { %152 = vmatpush.msra.mxu1 %v105_v28  ;;  %327 = vmatpush.msra.mxu3 %v319_v11  ;;  %v529_v28 = vld [vmem:[#allocation2 + $0x3f0] sm:$0xff]  ;;  %v301_v6 = vld [vmem:[#allocation2 + $0x140] sm:$0xff]  ;;  %v302_v8 = vld [vmem:[#allocation2 + $0x148] sm:$0xff] }
  0x27   :  { %172 = vmatpush.msra.mxu2 %v106_v29  ;;  %350 = vmatpush.msrb.mxu0 %v320_v12  ;;  %v530_v29 = vld [vmem:[#allocation2 + $0x3f8] sm:$0xff]  ;;  %v299_v9 = vld [vmem:[#allocation2 + $0x130] sm:$0xff]  ;;  %v515_v12 = vld [vmem:[#allocation2 + $0x380] sm:$0xff] }
  0x28   :  { %153 = vmatpush.msra.mxu1 %v103_v30  ;;  %328 = vmatpush.msra.mxu3 %v317_v15  ;;  %v527_v30 = vld [vmem:[#allocation2 + $0x3e0] sm:$0xff]  ;;  %v518_v10 = vld [vmem:[#allocation2 + $0x398] sm:$0xff] }
  0x29   :  { %173 = vmatpush.msra.mxu2 %v104_v31  ;;  %351 = vmatpush.msrb.mxu0 %v318_v16  ;;  %v528_v31 = vld [vmem:[#allocation2 + $0x3e8] sm:$0xff]  ;;  %v300_v11 = vld [vmem:[#allocation2 + $0x138] sm:$0xff] }
  0x2a   :  { %154 = vmatpush.msra.mxu1 %v101_v32  ;;  %329 = vmatpush.msra.mxu3 %v315_v19  ;;  %v295_v19 = vld [vmem:[#allocation2 + $0x110] sm:$0xff] }
  0x2b   :  { %174 = vmatpush.msra.mxu2 %v102_v33  ;;  %352 = vmatpush.msrb.mxu0 %v316_v20  ;;  %v2049_v33 = vshrl.u32 %v216_v18, 7  ;;  %v513_v18 = vld [vmem:[#allocation2 + $0x370] sm:$0xff]  ;;  %v514_v20 = vld [vmem:[#allocation2 + $0x378] sm:$0xff] }
  0x2c   :  { %371 = vmatpush.msrb.mxu1 %v291_v34  ;;  %v311_v34 = vld [vmem:[#allocation2 + $0x190] sm:$0xff]  ;;  %330 = vmatpush.msra.mxu3 %v313_v24  ;;  %v511_v24 = vld [vmem:[#allocation2 + $0x360] sm:$0xff] }
  0x2d   :  { %394 = vmatpush.msrb.mxu2 %v292_v35  ;;  %v312_v35 = vld [vmem:[#allocation2 + $0x198] sm:$0xff]  ;;  %353 = vmatpush.msrb.mxu0 %v314_v27 }
  0x2e   :  { %372 = vmatpush.msrb.mxu1 %v289_v36  ;;  %v2051_v36 = vunpack.c.0.s8 %v191_v23  ;;  %331 = vmatpush.msra.mxu3 %v311_v34  ;;  %v293_v23 = vld [vmem:[#allocation2 + $0x100] sm:$0xff]  ;;  %v448_v27 = vld [vmem:[#allocation2 + $0x2f8] sm:$0xff]  ;;  %v443_v34 = vld [vmem:[#allocation2 + $0x2d0] sm:$0xff] }
  0x2f   :  { %395 = vmatpush.msrb.mxu2 %v290_v37  ;;  %v525_v37 = vld [vmem:[#allocation2 + $0x3d0] sm:$0xff]  ;;  %354 = vmatpush.msrb.mxu0 %v312_v35  ;;  %v507_v35 = vld [vmem:[#allocation2 + $0x340] sm:$0xff] }
  0x30   :  { %373 = vmatpush.msrb.mxu1 %v287_v38  ;;  %v526_v38 = vld [vmem:[#allocation2 + $0x3d8] sm:$0xff] }
  0x31   :  { %396 = vmatpush.msrb.mxu2 %v288_v39 }
  0x32   :  { %374 = vmatpush.msrb.mxu1 %v285_v40 }
  0x33   :  { %397 = vmatpush.msrb.mxu2 %v286_v41  ;;  %v223_v41 = vand.u32 1, %v2049_v33 }
  0x34   :  { %375 = vmatpush.msrb.mxu1 %v283_v42  ;;  %v309_v42 = vld [vmem:[#allocation2 + $0x180] sm:$0xff] }
  0x35   :  { %398 = vmatpush.msrb.mxu2 %v284_v43  ;;  %v310_v43 = vld [vmem:[#allocation2 + $0x188] sm:$0xff]  ;;  %332 = vmatpush.msra.mxu3 %v309_v42  ;;  %vm2057_vm2 = vcmp.ne.s32.totalorder %v223_v41, 1  ;;  %v439_v41 = vld [vmem:[#allocation2 + $0x2b0] sm:$0xff]  ;;  %v440_v42 = vld [vmem:[#allocation2 + $0x2b8] sm:$0xff] }
  0x36   :  { %376 = vmatpush.msrb.mxu1 %v281_v44  ;;  %v523_v44 = vld [vmem:[#allocation2 + $0x3c0] sm:$0xff]  ;;  %355 = vmatpush.msrb.mxu0 %v310_v43 }
  0x37   :  { %399 = vmatpush.msrb.mxu2 %v282_v45  ;;  %v524_v45 = vld [vmem:[#allocation2 + $0x3c8] sm:$0xff]  ;;  %v437_v43 = vld [vmem:[#allocation2 + $0x2a0] sm:$0xff] }
  0x38   :  { %377 = vmatpush.msrb.mxu1 %v279_v46 }
  0x39   :  { %400 = vmatpush.msrb.mxu2 %v280_v47 }
  0x3a   :  { %378 = vmatpush.msrb.mxu1 %v277_v48 }
  0x3b   :  { %401 = vmatpush.msrb.mxu2 %v278_v49 }
  0x3c   :  { %379 = vmatpush.msrb.mxu1 %v275_v54  ;;  %v521_v54 = vld [vmem:[#allocation2 + $0x3b0] sm:$0xff] }
  0x3d   :  { %402 = vmatpush.msrb.mxu2 %v276_v55 }
  0x3e   :  { %380 = vmatpush.msrb.mxu1 %v273_v56  ;;  %v305_v56 = vld [vmem:[#allocation2 + $0x160] sm:$0xff] }
  0x3f   :  { %403 = vmatpush.msrb.mxu2 %v274_v57  ;;  %v522_v57 = vld [vmem:[#allocation2 + $0x3b8] sm:$0xff] }
  0x40   :  { %381 = vmatpush.msrb.mxu1 %v271_v58  ;;  %v306_v58 = vld [vmem:[#allocation2 + $0x168] sm:$0xff] }
  0x41   :  { %404 = vmatpush.msrb.mxu2 %v272_v59  ;;  %v519_v59 = vld [vmem:[#allocation2 + $0x3a0] sm:$0xff] }
  0x42   :  { %382 = vmatpush.msrb.mxu1 %v269_v60 }
  0x43   :  { %405 = vmatpush.msrb.mxu2 %v270_v61 }
  0x44   :  { %383 = vmatpush.msrb.mxu1 %v267_v62  ;;  %v1872_v62 = vmov 0.0  }
  0x45   :  { %406 = vmatpush.msrb.mxu2 %v268_v63  ;;  %v1717_v63 = vsel %vm2057_vm2, 1.0, %v1872_v62 }
  0x46   :  { %384 = vmatpush.msrb.mxu1 %v265_v0  ;;  %v303_v0 = vld [vmem:[#allocation2 + $0x150] sm:$0xff] }
  0x47   :  { %407 = vmatpush.msrb.mxu2 %v266_v1  ;;  %v520_v1 = vld [vmem:[#allocation2 + $0x3a8] sm:$0xff] }
  0x48   :  { %385 = vmatpush.msrb.mxu1 %v263_v2 }
  0x49   :  { %408 = vmatpush.msrb.mxu2 %v264_v3  ;;  %v304_v3 = vld [vmem:[#allocation2 + $0x158] sm:$0xff] }
  0x4a   :  { %386 = vmatpush.msrb.mxu1 %v261_v4  ;;  %v517_v4 = vld [vmem:[#allocation2 + $0x390] sm:$0xff] }
  0x4b   :  { %409 = vmatpush.msrb.mxu2 %v262_v5 }
  0x8a   :  { %v97_v51 = vpop.f32.mrf.mxu0 }
  0x8b   :  { %v98_v52 = vadd.f32 %v1812_v50, %v97_v51  ;;  %v307_v50 = vld [vmem:[#allocation2 + $0x170] sm:$0xff] }
  0x8c   :  { %333 = vmatpush.msra.mxu3 %v307_v50  ;;  %v506_v50 = vld [vmem:[#allocation2 + $0x338] sm:$0xff]  ;;  %v431_v51 = vld [vmem:[#allocation2 + $0x270] sm:$0xff] }
  0x8d   :  { %v100_v53 = vmax.f32 %v98_v52, 0.0  ;;  %v2062_v52 = vadd.s32 8, %v2049_v33 }
  0x8e   :  { %334 = vmatpush.msra.mxu3 %v305_v56  ;;  %v429_v56 = vld [vmem:[#allocation2 + $0x260] sm:$0xff] }
  0x8f   :  { %155 = vmatmul.f32.vlgmr.msra.gmra.mxu1 %v100_v53  ;;  %175 = vmatmul.f32.vlgmr.msra.gmra.mxu2 %v100_v53  ;;  %v308_v53 = vld [vmem:[#allocation2 + $0x178] sm:$0xff]  ;;  %v230_v2 = vand.u32 1, %v2062_v52 }
  0x90   :  { %531 = vmatpush.msra.mxu1 %v529_v28  ;;  %554 = vmatpush.msra.mxu2 %v530_v29  ;;  %v512_v28 = vld [vmem:[#allocation2 + $0x368] sm:$0xff]  ;;  %v445_v29 = vld [vmem:[#allocation2 + $0x2e0] sm:$0xff] }
  0x91   :  { %356 = vmatpush.msrb.mxu0 %v308_v53  ;;  %335 = vmatpush.msra.mxu3 %v303_v0  ;;  %vm244_vm4 = vcmp.ne.s32.totalorder %v230_v2, 1  ;;  %v432_v53 = vld [vmem:[#allocation2 + $0x278] sm:$0xff]  ;;  %v500_v0 = vld [vmem:[#allocation2 + $0x308] sm:$0xff] }
  0x92   :  { %532 = vmatpush.msra.mxu1 %v527_v30  ;;  %555 = vmatpush.msra.mxu2 %v528_v31  ;;  %v1718_v16 = vsel %vm244_vm4, 1.0, %v1872_v62  ;;  %v509_v30 = vld [vmem:[#allocation2 + $0x350] sm:$0xff]  ;;  %v446_v31 = vld [vmem:[#allocation2 + $0x2e8] sm:$0xff]  ;;  %vm1701_vm4 = vcmask 261120  }
  0x93   :  { %357 = vmatpush.msrb.mxu0 %v306_v58  ;;  %336 = vmatpush.msra.mxu3 %v301_v6  ;;  %v501_v58 = vld [vmem:[#allocation2 + $0x310] sm:$0xff]  ;;  %v426_v2 = vld [vmem:[#allocation2 + $0x248] sm:$0xff] }
  0x94   :  { %533 = vmatpush.msra.mxu1 %v525_v37  ;;  %556 = vmatpush.msra.mxu2 %v526_v38  ;;  %v444_v37 = vld [vmem:[#allocation2 + $0x2d8] sm:$0xff]  ;;  %v508_v38 = vld [vmem:[#allocation2 + $0x348] sm:$0xff] }
  0x95   :  { %358 = vmatpush.msrb.mxu0 %v304_v3  ;;  %337 = vmatpush.msra.mxu3 %v299_v9  ;;  %v423_v3 = vld [vmem:[#allocation2 + $0x230] sm:$0xff]  ;;  %v422_v6 = vld [vmem:[#allocation2 + $0x228] sm:$0xff]  ;;  %v420_v9 = vld [vmem:[#allocation2 + $0x218] sm:$0xff] }
  0x96   :  { %534 = vmatpush.msra.mxu1 %v523_v44  ;;  %557 = vmatpush.msra.mxu2 %v524_v45  ;;  %v438_v44 = vld [vmem:[#allocation2 + $0x2a8] sm:$0xff]  ;;  %v435_v45 = vld [vmem:[#allocation2 + $0x290] sm:$0xff] }
  0x97   :  { %359 = vmatpush.msrb.mxu0 %v302_v8  ;;  %v419_v8 = vld [vmem:[#allocation2 + $0x210] sm:$0xff] }
  0x98   :  { %535 = vmatpush.msra.mxu1 %v521_v54  ;;  %558 = vmatpush.msra.mxu2 %v522_v57  ;;  %v503_v54 = vld [vmem:[#allocation2 + $0x320] sm:$0xff]  ;;  %v430_v57 = vld [vmem:[#allocation2 + $0x268] sm:$0xff] }
  0x99   :  { %360 = vmatpush.msrb.mxu0 %v300_v11  ;;  %v418_v11 = vld [vmem:[#allocation2 + $0x208] sm:$0xff] }
  0x9a   :  { %536 = vmatpush.msra.mxu1 %v519_v59  ;;  %559 = vmatpush.msra.mxu2 %v520_v1  ;;  %v502_v59 = vld [vmem:[#allocation2 + $0x318] sm:$0xff]  ;;  %v425_v1 = vld [vmem:[#allocation2 + $0x240] sm:$0xff] }
  0x9c   :  { %537 = vmatpush.msra.mxu1 %v517_v4  ;;  %560 = vmatpush.msra.mxu2 %v518_v10  ;;  %v424_v4 = vld [vmem:[#allocation2 + $0x238] sm:$0xff]  ;;  %v417_v10 = vld [vmem:[#allocation2 + $0x200] sm:$0xff] }
  0x9e   :  { %538 = vmatpush.msra.mxu1 %v515_v12 }
  0xa0   :  { %539 = vmatpush.msra.mxu1 %v513_v18  ;;  %v774_v18 = vld [vmem:[#allocation4 + $0xe0] sm:$0xff] }
  0xa2   :  { %540 = vmatpush.msra.mxu1 %v511_v24  ;;  %v771_v24 = vld [vmem:[#allocation4 + $0xc8] sm:$0xff] }
  0xa4   :  { %541 = vmatpush.msra.mxu1 %v509_v30  ;;  %v763_v30 = vld [vmem:[#allocation4 + $0x88] sm:$0xff] }
  0xa6   :  { %542 = vmatpush.msra.mxu1 %v507_v35  ;;  %v759_v35 = vld [vmem:[#allocation4 + $0x68] sm:$0xff] }
 0x10c   :  { %v156_v17 = vpop.f32.mrf.mxu1 }
 0x10d   :  { %v157_v25 = vadd.f32 %v156_v17, %v135_v13  ;;  %v297_v13 = vld [vmem:[#allocation2 + $0x120] sm:$0xff]  ;;  %v298_v17 = vld [vmem:[#allocation2 + $0x128] sm:$0xff] }
 0x10e   :  { %338 = vmatpush.msra.mxu3 %v297_v13  ;;  %361 = vmatpush.msrb.mxu0 %v298_v17  ;;  %v777_v17 = vld [vmem:[#allocation4 + $0xf8] sm:$0xff] }
 0x10f   :  { %v179_v39 = vmax.f32 %v157_v25, 0.0  ;;  %v294_v25 = vld [vmem:[#allocation2 + $0x108] sm:$0xff] }
 0x110   :  { %339 = vmatpush.msra.mxu3 %v295_v19  ;;  %v775_v19 = vld [vmem:[#allocation4 + $0xe8] sm:$0xff] }
 0x112   :  { %v176_v21 = vpop.f32.mrf.mxu2  ;;  %340 = vmatpush.msra.mxu3 %v293_v23  ;;  %v770_v23 = vld [vmem:[#allocation4 + $0xc0] sm:$0xff] }
 0x113   :  { %v177_v26 = vadd.f32 %v176_v21, %v136_v14  ;;  %v516_v14 = vld [vmem:[#allocation2 + $0x388] sm:$0xff]  ;;  %v296_v21 = vld [vmem:[#allocation2 + $0x118] sm:$0xff] }
 0x114   :  { %561 = vmatpush.msra.mxu2 %v516_v14  ;;  %362 = vmatpush.msrb.mxu0 %v296_v21  ;;  %v773_v21 = vld [vmem:[#allocation4 + $0xd8] sm:$0xff] }
 0x115   :  { %v180_v32 = vmax.f32 %v177_v26, 0.0  ;;  %v447_v26 = vld [vmem:[#allocation2 + $0x2f0] sm:$0xff] }
 0x116   :  { %562 = vmatpush.msra.mxu2 %v514_v20  ;;  %363 = vmatpush.msrb.mxu0 %v294_v25  ;;  %v772_v20 = vld [vmem:[#allocation4 + $0xd0] sm:$0xff] }
 0x117   :  { %v183_v40 = vrot.slane %v180_v32, 4  ;;  %449 = vmatpush.msrb.mxu3 %v447_v26  ;;  %v510_v32 = vld [vmem:[#allocation2 + $0x358] sm:$0xff]  ;;  %v768_v25 = vld [vmem:[#allocation4 + $0xb0] sm:$0xff]  ;;  %v767_v26 = vld [vmem:[#allocation4 + $0xa8] sm:$0xff] }
 0x118   :  { %472 = vmatpush.msra.mxu0 %v448_v27  ;;  %563 = vmatpush.msra.mxu2 %v512_v28  ;;  %v764_v27 = vld [vmem:[#allocation4 + $0x90] sm:$0xff]  ;;  %v765_v28 = vld [vmem:[#allocation4 + $0x98] sm:$0xff] }
 0x119   :  { %v185_v46 = vsel %vm184_vm1, %v179_v39, %v183_v40  ;;  %v186_v47 = vsel %vm184_vm1, %v183_v40, %v179_v39  ;;  %450 = vmatpush.msrb.mxu3 %v445_v29  ;;  %v441_v39 = vld [vmem:[#allocation2 + $0x2c0] sm:$0xff]  ;;  %v442_v40 = vld [vmem:[#allocation2 + $0x2c8] sm:$0xff] }
 0x11a   :  { %v187_v48 = vrot.slane %v186_v47, 4  ;;  %v193_v49 = vperm.slane %v185_v46, %v2051_v36  ;;  %473 = vmatpush.msra.mxu0 %v446_v31  ;;  %564 = vmatpush.msra.mxu2 %v510_v32  ;;  %v436_v46 = vld [vmem:[#allocation2 + $0x298] sm:$0xff]  ;;  %v433_v47 = vld [vmem:[#allocation2 + $0x280] sm:$0xff]  ;;  %v760_v31 = vld [vmem:[#allocation4 + $0x70] sm:$0xff] }
 0x11b   :  { %451 = vmatpush.msrb.mxu3 %v443_v34  ;;  %v762_v29 = vld [vmem:[#allocation4 + $0x80] sm:$0xff]  ;;  %v761_v32 = vld [vmem:[#allocation4 + $0x78] sm:$0xff] }
 0x11c   :  { %v197_v55 = vperm.slane %v187_v48, %v2051_v36  ;;  %200 = vrot.lane.b32.xlu0 %v193_v49, %s1871_s4  ;;  %387 = vmatmul.f32.vlgmr.msrb.gmra.mxu1 %v193_v49  ;;  %v210_v60 = vrot.slane %v193_v49, 1  ;;  %v434_v48 = vld [vmem:[#allocation2 + $0x288] sm:$0xff]  ;;  %v758_v34 = vld [vmem:[#allocation4 + $0x60] sm:$0xff] }
 0x11d   :  { %410 = vmatmul.f32.vlgmr.msrb.gmra.mxu2 %v193_v49  ;;  %474 = vmatpush.msra.mxu0 %v444_v37  ;;  %v505_v49 = vld [vmem:[#allocation2 + $0x330] sm:$0xff] }
 0x11e   :  { %v211_v61 = vrot.slane %v197_v55, 1  ;;  %565 = vmatpush.msra.mxu2 %v508_v38  ;;  %452 = vmatpush.msrb.mxu3 %v441_v39  ;;  %v756_v37 = vld [vmem:[#allocation4 + $0x50] sm:$0xff]  ;;  %v757_v38 = vld [vmem:[#allocation4 + $0x58] sm:$0xff]  ;;  %v754_v39 = vld [vmem:[#allocation4 + $0x40] sm:$0xff] }
 0x11f   :  { %475 = vmatpush.msra.mxu0 %v442_v40  ;;  %543 = vmatpush.msra.mxu1 %v505_v49  ;;  %v755_v40 = vld [vmem:[#allocation4 + $0x48] sm:$0xff]  ;;  %v746_v49 = vld [vmem:[#allocation4] sm:$0xff] }
 0x120   :  { %v212_v5 = vsel %vm209_vm3, %v210_v60, %v211_v61  ;;  %v215_v15 = vsel %vm209_vm3, %v211_v61, 0.0  ;;  %453 = vmatpush.msrb.mxu3 %v439_v41  ;;  %566 = vmatpush.msra.mxu2 %v506_v50  ;;  %v427_v60 = vld [vmem:[#allocation2 + $0x250] sm:$0xff]  ;;  %v428_v61 = vld [vmem:[#allocation2 + $0x258] sm:$0xff]  ;;  %v747_v50 = vld [vmem:[#allocation4 + $0x8] sm:$0xff] }
 0x121   :  { %v2071_v7 = vmul.f32 %v1717_v63, %v212_v5  ;;  %v2078_v22 = vmul.f32 %v1718_v16, %v215_v15  ;;  %476 = vmatpush.msra.mxu0 %v440_v42  ;;  %544 = vmatpush.msra.mxu1 %v503_v54  ;;  %v499_v63 = vld [vmem:[#allocation2 + $0x300] sm:$0xff]  ;;  %v776_v16 = vld [vmem:[#allocation4 + $0xf0] sm:$0xff]  ;;  %v753_v42 = vld [vmem:[#allocation4 + $0x38] sm:$0xff] }
 0x122   :  { %454 = vmatpush.msrb.mxu3 %v437_v43  ;;  %v421_v5 = vld [vmem:[#allocation2 + $0x220] sm:$0xff]  ;;  %v752_v41 = vld [vmem:[#allocation4 + $0x30] sm:$0xff] }
 0x123   :  { %253 = vrot.lane.b32.xlu1 %v2071_v7, %s1871_s4  ;;  %477 = vmatpush.msra.mxu0 %v438_v44  ;;  %v750_v43 = vld [vmem:[#allocation4 + $0x20] sm:$0xff]  ;;  %v751_v44 = vld [vmem:[#allocation4 + $0x28] sm:$0xff] }
 0x124   :  { %202 = vrot.lane.b32.xlu0 %v197_v55, %s1871_s4  ;;  %390 = vmatmul.f32.gmra.mxu1 %v197_v55 }
 0x125   :  { %413 = vmatmul.f32.gmra.mxu2 %v197_v55  ;;  %455 = vmatpush.msrb.mxu3 %v435_v45  ;;  %v504_v55 = vld [vmem:[#allocation2 + $0x328] sm:$0xff] }
 0x126   :  { %478 = vmatpush.msra.mxu0 %v436_v46  ;;  %567 = vmatpush.msra.mxu2 %v504_v55  ;;  %v748_v46 = vld [vmem:[#allocation4 + $0x10] sm:$0xff] }
 0x127   :  { %456 = vmatpush.msrb.mxu3 %v433_v47  ;;  %545 = vmatpush.msra.mxu1 %v501_v58  ;;  %v749_v47 = vld [vmem:[#allocation4 + $0x18] sm:$0xff]  ;;  %v581_v58 = vld [vmem:[%s2645_s6] sm:$0x3]  ;;  %s1873_s6 = smov 96  }
 0x128   :  { %479 = vmatpush.msra.mxu0 %v434_v48  ;;  %568 = vmatpush.msra.mxu2 %v502_v59 }
 0x129   :  { %457 = vmatpush.msrb.mxu3 %v431_v51  ;;  %546 = vmatpush.msra.mxu1 %v499_v63 }
 0x12a   :  { %480 = vmatpush.msra.mxu0 %v432_v53  ;;  %569 = vmatpush.msra.mxu2 %v500_v0  ;;  %v584_v0 = vperm.slane %v581_v58, 1 }
 0x12b   :  { %255 = vrot.lane.b32.xlu1 %v2078_v22, %s1871_s4  ;;  %458 = vmatpush.msrb.mxu3 %v429_v56 }
 0x12c   :  { %481 = vmatpush.msra.mxu0 %v430_v57  ;;  %868 = vmatpush.msrb.mxu1 %v776_v16 }
 0x12d   :  { %459 = vmatpush.msrb.mxu3 %v427_v60  ;;  %897 = vmatpush.msrb.mxu2 %v777_v17  ;;  %v808_v17 = vld [vmem:[#allocation4 + $0x1f0] sm:$0xff] }
 0x12e   :  { %482 = vmatpush.msra.mxu0 %v428_v61  ;;  %869 = vmatpush.msrb.mxu1 %v774_v18  ;;  %v809_v18 = vld [vmem:[#allocation4 + $0x1f8] sm:$0xff] }
 0x12f   :  { %460 = vmatpush.msrb.mxu3 %v425_v1  ;;  %898 = vmatpush.msrb.mxu2 %v775_v19  ;;  %v806_v19 = vld [vmem:[#allocation4 + $0x1e0] sm:$0xff] }
 0x130   :  { %483 = vmatpush.msra.mxu0 %v426_v2  ;;  %870 = vmatpush.msrb.mxu1 %v772_v20  ;;  %v807_v20 = vld [vmem:[#allocation4 + $0x1e8] sm:$0xff] }
 0x131   :  { %461 = vmatpush.msrb.mxu3 %v423_v3  ;;  %899 = vmatpush.msrb.mxu2 %v773_v21 }
 0x132   :  { %484 = vmatpush.msra.mxu0 %v424_v4  ;;  %871 = vmatpush.msrb.mxu1 %v770_v23 }
 0x133   :  { %462 = vmatpush.msrb.mxu3 %v421_v5  ;;  %900 = vmatpush.msrb.mxu2 %v771_v24 }
 0x134   :  { %485 = vmatpush.msra.mxu0 %v422_v6  ;;  %872 = vmatpush.msrb.mxu1 %v768_v25 }
 0x135   :  { %463 = vmatpush.msrb.mxu3 %v419_v8 }
 0x136   :  { %486 = vmatpush.msra.mxu0 %v420_v9  ;;  %v583_v9 = vperm.slane %v581_v58, 0 }
 0x137   :  { %464 = vmatpush.msrb.mxu3 %v417_v10 }
 0x138   :  { %487 = vmatpush.msra.mxu0 %v418_v11 }
 0x18e   :  { %v201_v12 = vpop.permute.xlu0 %200 }
 0x18f   :  { %1719 = vmatmul.msk.f32.vlgmr.msra.gmra.mxu3 %vm206_vm5, %v201_v12  ;;  %1721 = vmatmul.msk.f32.vlgmr.msrb.gmra.mxu0 %vm206_vm5, %v201_v12 }
 0x190   :  { %810 = vmatpush.msra.mxu3 %v808_v17  ;;  %839 = vmatpush.msrb.mxu0 %v809_v18 }
 0x192   :  { %811 = vmatpush.msra.mxu3 %v806_v19  ;;  %840 = vmatpush.msrb.mxu0 %v807_v20  ;;  %v793_v19 = vld [vmem:[#allocation4 + $0x178] sm:$0xff] }
 0x193   :  { %v1047_v20 = vld [vmem:[#allocation4 + $0x3b8] sm:$0xff] }
 0x195   :  { %v254_v13 = vpop.permute.xlu1 %253 }
 0x196   :  { %v203_v14 = vpop.permute.xlu0 %202  ;;  %1723 = vmatmul.msk.f32.vlgmr.msra.gmra.mxu1 %vm206_vm5, %v254_v13  ;;  %1725 = vmatmul.msk.f32.vlgmr.msra.gmra.mxu2 %vm206_vm5, %v254_v13 }
 0x197   :  { %1720 = vmatmul.msk.f32.gmra.mxu3 %vm206_vm5, %v203_v14  ;;  %1722 = vmatmul.msk.f32.gmra.mxu0 %vm206_vm5, %v203_v14 }
 0x199   :  { %v388_v51 = vpop.f32.mrf.mxu1 }
 0x19d   :  { %v256_v15 = vpop.permute.xlu1 %255 }
 0x19e   :  { %1724 = vmatmul.msk.f32.gmra.mxu1 %vm206_vm5, %v256_v15  ;;  %1726 = vmatmul.msk.f32.gmra.mxu2 %vm206_vm5, %v256_v15 }
 0x19f   :  { %465 = vmatmul.f32.vlgmr.msrb.gmra.mxu3 %v2071_v7  ;;  %488 = vmatmul.f32.vlgmr.msra.gmra.mxu0 %v2071_v7  ;;  %v769_v7 = vld [vmem:[#allocation4 + $0xb8] sm:$0xff] }
 0x1a0   :  { %901 = vmatpush.msrb.mxu2 %v769_v7  ;;  %v411_v45 = vpop.f32.mrf.mxu2  ;;  %v804_v7 = vld [vmem:[#allocation4 + $0x1d0] sm:$0xff] }
 0x1a1   :  { %v391_v56 = vpop.f32.mrf.mxu1  ;;  %812 = vmatpush.msra.mxu3 %v804_v7  ;;  %v1044_v7 = vld [vmem:[#allocation4 + $0x3a0] sm:$0xff] }
 0x1a2   :  { %902 = vmatpush.msrb.mxu2 %v767_v26 }
 0x1a4   :  { %903 = vmatpush.msrb.mxu2 %v765_v28 }
 0x1a6   :  { %904 = vmatpush.msrb.mxu2 %v763_v30 }
 0x1a7   :  { %468 = vmatmul.f32.gmra.mxu3 %v2078_v22  ;;  %491 = vmatmul.f32.gmra.mxu0 %v2078_v22  ;;  %v766_v22 = vld [vmem:[#allocation4 + $0xa0] sm:$0xff] }
 0x1a8   :  { %873 = vmatpush.msrb.mxu1 %v766_v22  ;;  %905 = vmatpush.msrb.mxu2 %v761_v32  ;;  %v414_v54 = vpop.f32.mrf.mxu2  ;;  %v805_v22 = vld [vmem:[#allocation4 + $0x1d8] sm:$0xff]  ;;  %v802_v32 = vld [vmem:[#allocation4 + $0x1c0] sm:$0xff] }
 0x1a9   :  { %841 = vmatpush.msrb.mxu0 %v805_v22  ;;  %813 = vmatpush.msra.mxu3 %v802_v32  ;;  %v1045_v32 = vld [vmem:[#allocation4 + $0x3a8] sm:$0xff] }
 0x1aa   :  { %874 = vmatpush.msrb.mxu1 %v764_v27  ;;  %906 = vmatpush.msrb.mxu2 %v759_v35 }
 0x1ac   :  { %875 = vmatpush.msrb.mxu1 %v762_v29  ;;  %907 = vmatpush.msrb.mxu2 %v757_v38  ;;  %v803_v38 = vld [vmem:[#allocation4 + $0x1c8] sm:$0xff] }
 0x1ad   :  { %842 = vmatpush.msrb.mxu0 %v803_v38  ;;  %v1043_v38 = vld [vmem:[#allocation4 + $0x398] sm:$0xff] }
 0x1ae   :  { %876 = vmatpush.msrb.mxu1 %v760_v31  ;;  %908 = vmatpush.msrb.mxu2 %v755_v40  ;;  %v800_v40 = vld [vmem:[#allocation4 + $0x1b0] sm:$0xff] }
 0x1af   :  { %814 = vmatpush.msra.mxu3 %v800_v40 }
 0x1b0   :  { %877 = vmatpush.msrb.mxu1 %v758_v34  ;;  %909 = vmatpush.msrb.mxu2 %v753_v42 }
 0x1b2   :  { %878 = vmatpush.msrb.mxu1 %v756_v37  ;;  %910 = vmatpush.msrb.mxu2 %v751_v44  ;;  %v1052_v44 = vld [vmem:[#allocation4 + $0x3e0] sm:$0xff] }
 0x1b4   :  { %879 = vmatpush.msrb.mxu1 %v754_v39  ;;  %911 = vmatpush.msrb.mxu2 %v749_v47  ;;  %v1054_v39 = vld [vmem:[#allocation4 + $0x3f0] sm:$0xff]  ;;  %v1053_v47 = vld [vmem:[#allocation4 + $0x3e8] sm:$0xff] }
 0x1b6   :  { %880 = vmatpush.msrb.mxu1 %v752_v41  ;;  %912 = vmatpush.msrb.mxu2 %v747_v50  ;;  %v1055_v41 = vld [vmem:[#allocation4 + $0x3f8] sm:$0xff] }
 0x1b8   :  { %881 = vmatpush.msrb.mxu1 %v750_v43  ;;  %v801_v43 = vld [vmem:[#allocation4 + $0x1b8] sm:$0xff]  ;;  %1085 = vmatpush.msra.mxu2 %v1055_v41  ;;  %v787_v41 = vld [vmem:[#allocation4 + $0x148] sm:$0xff] }
 0x1b9   :  { %843 = vmatpush.msrb.mxu0 %v801_v43  ;;  %v784_v43 = vld [vmem:[#allocation4 + $0x130] sm:$0xff] }
 0x1ba   :  { %882 = vmatpush.msrb.mxu1 %v748_v46  ;;  %v798_v46 = vld [vmem:[#allocation4 + $0x1a0] sm:$0xff]  ;;  %1086 = vmatpush.msra.mxu2 %v1053_v47  ;;  %v785_v47 = vld [vmem:[#allocation4 + $0x138] sm:$0xff] }
 0x1bb   :  { %815 = vmatpush.msra.mxu3 %v798_v46 }
 0x1bc   :  { %883 = vmatpush.msrb.mxu1 %v746_v49 }
 0x1be   :  { %1056 = vmatpush.msra.mxu1 %v1054_v39 }
 0x1c0   :  { %1057 = vmatpush.msra.mxu1 %v1052_v44  ;;  %v1041_v44 = vld [vmem:[#allocation4 + $0x388] sm:$0xff] }
 0x20c   :  { %v365_v48 = vpop.f32.mrf.mxu0 }
 0x20d   :  { %v412_v59 = vadd.f32 %v411_v45, %v365_v48  ;;  %v2099_v45 = vadd.s32 16, %v2049_v33 }
 0x212   :  { %v342_v53 = vpop.f32.mrf.mxu3 }
 0x213   :  { %v389_v2 = vadd.f32 %v388_v51, %v342_v53  ;;  %v548_v4 = vpop.f32.mrf.mxu1  ;;  %v799_v51 = vld [vmem:[#allocation4 + $0x1a8] sm:$0xff]  ;;  %v1050_v53 = vld [vmem:[#allocation4 + $0x3d0] sm:$0xff] }
 0x214   :  { %v368_v55 = vpop.f32.mrf.mxu0  ;;  %844 = vmatpush.msrb.mxu0 %v799_v51  ;;  %1058 = vmatpush.msra.mxu1 %v1050_v53  ;;  %v781_v51 = vld [vmem:[#allocation4 + $0x118] sm:$0xff]  ;;  %v778_v53 = vld [vmem:[#allocation4 + $0x100] sm:$0xff] }
 0x215   :  { %v415_v6 = vadd.f32 %v414_v54, %v368_v55  ;;  %v666_v54 = vand.u32 3, %v2049_v33  ;;  %v796_v55 = vld [vmem:[#allocation4 + $0x190] sm:$0xff] }
 0x216   :  { %816 = vmatpush.msra.mxu3 %v796_v55  ;;  %v1038_v55 = vld [vmem:[#allocation4 + $0x370] sm:$0xff] }
 0x217   :  { %vm2112_vm6 = vcmp.ne.s32.totalorder %v666_v54, 3  ;;  %v779_v54 = vld [vmem:[#allocation4 + $0x108] sm:$0xff] }
 0x218   :  { %v1727_v18 = vsel %vm2112_vm6, 1.0, %v1872_v62 }
 0x219   :  { %v571_v60 = vpop.f32.mrf.mxu2 }
 0x21a   :  { %v345_v57 = vpop.f32.mrf.mxu3 }
 0x21b   :  { %v392_v21 = vadd.f32 %v391_v56, %v345_v57  ;;  %v551_v30 = vpop.f32.mrf.mxu1  ;;  %v1051_v56 = vld [vmem:[#allocation4 + $0x3d8] sm:$0xff] }
 0x21c   :  { %v489_v61 = vpop.f32.mrf.mxu0  ;;  %1087 = vmatpush.msra.mxu2 %v1051_v56  ;;  %v1039_v56 = vld [vmem:[#allocation4 + $0x378] sm:$0xff] }
 0x21d   :  { %v496_v63 = vadd.f32 %v489_v61, %v412_v59  ;;  %v673_v59 = vand.u32 3, %v2062_v52 }
 0x21f   :  { %v578_v1 = vadd.f32 %v571_v60, %v496_v63  ;;  %v680_v63 = vand.u32 3, %v2099_v45  ;;  %vm2121_vm7 = vcmp.ne.s32.totalorder %v673_v59, 3  ;;  %v1034_v59 = vld [vmem:[#allocation4 + $0x350] sm:$0xff] }
 0x221   :  { %v588_v3 = vadd.f32 %v584_v0, %v578_v1  ;;  %v574_v14 = vpop.f32.mrf.mxu2  ;;  %v797_v1 = vld [vmem:[#allocation4 + $0x198] sm:$0xff]  ;;  %vm2128_vm8 = vcmp.ne.s32.totalorder %v680_v63, 3  ;;  %v1033_v63 = vld [vmem:[#allocation4 + $0x348] sm:$0xff] }
 0x222   :  { %v466_v5 = vpop.f32.mrf.mxu3  ;;  %845 = vmatpush.msrb.mxu0 %v797_v1  ;;  %v1031_v1 = vld [vmem:[#allocation4 + $0x338] sm:$0xff] }
 0x223   :  { %v495_v8 = vadd.f32 %v466_v5, %v389_v2  ;;  %v592_v11 = vmax.f32 %v588_v3, 0.0  ;;  %v2117_v5 = vadd.s32 24, %v2049_v33  ;;  %v1029_v3 = vld [vmem:[#allocation4 + $0x328] sm:$0xff] }
 0x224   :  { %v492_v10 = vpop.f32.mrf.mxu0 }
 0x225   :  { %v577_v12 = vadd.f32 %v548_v4, %v495_v8  ;;  %v498_v13 = vadd.f32 %v492_v10, %v415_v6  ;;  %v599_v23 = vrot.slane %v592_v11, 4  ;;  %v794_v6 = vld [vmem:[#allocation4 + $0x180] sm:$0xff]  ;;  %v795_v11 = vld [vmem:[#allocation4 + $0x188] sm:$0xff]  ;;  %v956_v10 = vld [vmem:[#allocation4 + $0x2f0] sm:$0xff] }
 0x226   :  { %v1048_v8 = vld [vmem:[#allocation4 + $0x3c0] sm:$0xff]  ;;  %817 = vmatpush.msra.mxu3 %v794_v6  ;;  %846 = vmatpush.msrb.mxu0 %v795_v11  ;;  %v1027_v6 = vld [vmem:[#allocation4 + $0x318] sm:$0xff] }
 0x227   :  { %v587_v15 = vadd.f32 %v583_v9, %v577_v12  ;;  %v580_v16 = vadd.f32 %v574_v14, %v498_v13  ;;  %v1049_v12 = vld [vmem:[#allocation4 + $0x3c8] sm:$0xff]  ;;  %1059 = vmatpush.msra.mxu1 %v1048_v8  ;;  %v1024_v8 = vld [vmem:[#allocation4 + $0x300] sm:$0xff]  ;;  %v957_v11 = vld [vmem:[#allocation4 + $0x2f8] sm:$0xff] }
 0x228   :  { %1088 = vmatpush.msra.mxu2 %v1049_v12  ;;  %847 = vmatpush.msrb.mxu0 %v793_v19  ;;  %v954_v12 = vld [vmem:[#allocation4 + $0x2e0] sm:$0xff]  ;;  %v952_v14 = vld [vmem:[#allocation4 + $0x2d0] sm:$0xff]  ;;  %v949_v19 = vld [vmem:[#allocation4 + $0x2b8] sm:$0xff] }
 0x229   :  { %v591_v24 = vmax.f32 %v587_v15, 0.0  ;;  %v590_v25 = vadd.f32 %v584_v0, %v580_v16  ;;  %v792_v15 = vld [vmem:[#allocation4 + $0x170] sm:$0xff] }
 0x22a   :  { %v469_v26 = vpop.f32.mrf.mxu3  ;;  %v1046_v16 = vld [vmem:[#allocation4 + $0x3b0] sm:$0xff]  ;;  %818 = vmatpush.msra.mxu3 %v792_v15  ;;  %1089 = vmatpush.msra.mxu2 %v1047_v20  ;;  %v953_v15 = vld [vmem:[#allocation4 + $0x2d8] sm:$0xff]  ;;  %v946_v20 = vld [vmem:[#allocation4 + $0x2a0] sm:$0xff] }
 0x22b   :  { %v602_v27 = vsel %vm184_vm1, %v599_v23, %v591_v24  ;;  %v497_v28 = vadd.f32 %v469_v26, %v392_v21  ;;  %v601_v29 = vsel %vm184_vm1, %v591_v24, %v599_v23  ;;  %v594_v34 = vmax.f32 %v590_v25, 0.0  ;;  %v790_v25 = vld [vmem:[#allocation4 + $0x160] sm:$0xff]  ;;  %1060 = vmatpush.msra.mxu1 %v1046_v16 }
 0x22c   :  { %v2092_v31 = vperm.slane %v601_v29, %v2051_v36  ;;  %v603_v37 = vrot.slane %v602_v27, 4  ;;  %v1728_v23 = vsel %vm2121_vm7, 1.0, %v1872_v62  ;;  %v687_v24 = vand.u32 3, %v2117_v5  ;;  %819 = vmatpush.msra.mxu3 %v790_v25  ;;  %v791_v29 = vld [vmem:[#allocation4 + $0x168] sm:$0xff]  ;;  %1090 = vmatpush.msra.mxu2 %v1045_v32  ;;  %v950_v16 = vld [vmem:[#allocation4 + $0x2c0] sm:$0xff] }
 0x22d   :  { %v579_v35 = vadd.f32 %v551_v30, %v497_v28  ;;  %v600_v48 = vrot.slane %v594_v34, 4  ;;  %v1729_v26 = vsel %vm2128_vm8, 1.0, %v1872_v62  ;;  %1061 = vmatpush.msra.mxu1 %v1044_v7  ;;  %v789_v34 = vld [vmem:[#allocation4 + $0x158] sm:$0xff]  ;;  %848 = vmatpush.msrb.mxu0 %v791_v29  ;;  %v942_v25 = vld [vmem:[#allocation4 + $0x280] sm:$0xff]  ;;  %v943_v7 = vld [vmem:[#allocation4 + $0x288] sm:$0xff] }
 0x22e   :  { %631 = vrot.lane.b32.xlu2 %v2092_v31, %s1873_s6  ;;  %884 = vmatmul.f32.vlgmr.msrb.gmra.mxu1 %v2092_v31  ;;  %v618_v50 = vperm.slane %v603_v37, %v2051_v36  ;;  %vm713_vm9 = vcmp.ne.s32.totalorder %v687_v24, 3  ;;  %v786_v37 = vld [vmem:[#allocation4 + $0x140] sm:$0xff]  ;;  %v945_v24 = vld [vmem:[#allocation4 + $0x298] sm:$0xff]  ;;  %v939_v32 = vld [vmem:[#allocation4 + $0x268] sm:$0xff] }
 0x22f   :  { %v589_v42 = vadd.f32 %v583_v9, %v579_v35  ;;  %913 = vmatmul.f32.vlgmr.msrb.gmra.mxu2 %v2092_v31  ;;  %v648_v9 = vrot.slane %v2092_v31, 1  ;;  %v788_v31 = vld [vmem:[#allocation4 + $0x150] sm:$0xff]  ;;  %v1730_v40 = vsel %vm713_vm9, 1.0, %v1872_v62  ;;  %849 = vmatpush.msrb.mxu0 %v789_v34  ;;  %v941_v29 = vld [vmem:[#allocation4 + $0x278] sm:$0xff] }
 0x230   :  { %v649_v0 = vrot.slane %v618_v50, 1  ;;  %v1042_v35 = vld [vmem:[#allocation4 + $0x390] sm:$0xff]  ;;  %820 = vmatpush.msra.mxu3 %v788_v31  ;;  %1091 = vmatpush.msra.mxu2 %v1043_v38  ;;  %v938_v31 = vld [vmem:[#allocation4 + $0x260] sm:$0xff]  ;;  %v935_v38 = vld [vmem:[#allocation4 + $0x248] sm:$0xff] }
 0x231   :  { %v593_v49 = vmax.f32 %v589_v42, 0.0  ;;  %v1040_v42 = vld [vmem:[#allocation4 + $0x380] sm:$0xff]  ;;  %1062 = vmatpush.msra.mxu1 %v1042_v35  ;;  %850 = vmatpush.msrb.mxu0 %v787_v41  ;;  %v936_v34 = vld [vmem:[#allocation4 + $0x250] sm:$0xff]  ;;  %v937_v35 = vld [vmem:[#allocation4 + $0x258] sm:$0xff] }
 0x232   :  { %v650_v17 = vsel %vm209_vm3, %v648_v9, %v649_v0  ;;  %821 = vmatpush.msra.mxu3 %v786_v37  ;;  %1092 = vmatpush.msra.mxu2 %v1041_v44  ;;  %v1025_v9 = vld [vmem:[#allocation4 + $0x308] sm:$0xff]  ;;  %v934_v37 = vld [vmem:[#allocation4 + $0x240] sm:$0xff]  ;;  %v933_v41 = vld [vmem:[#allocation4 + $0x238] sm:$0xff] }
 0x233   :  { %v605_v57 = vsel %vm184_vm1, %v600_v48, %v593_v49  ;;  %v604_v58 = vsel %vm184_vm1, %v593_v49, %v600_v48  ;;  %v2145_v27 = vmul.f32 %v1727_v18, %v650_v17  ;;  %1063 = vmatpush.msra.mxu1 %v1040_v42  ;;  %v782_v48 = vld [vmem:[#allocation4 + $0x120] sm:$0xff]  ;;  %v783_v49 = vld [vmem:[#allocation4 + $0x128] sm:$0xff]  ;;  %851 = vmatpush.msrb.mxu0 %v785_v47  ;;  %v948_v18 = vld [vmem:[#allocation4 + $0x2b0] sm:$0xff] }
 0x234   :  { %v622_v60 = vperm.slane %v604_v58, %v2051_v36  ;;  %v606_v61 = vrot.slane %v605_v57, 4  ;;  %822 = vmatpush.msra.mxu3 %v784_v43  ;;  %v1036_v57 = vld [vmem:[#allocation4 + $0x360] sm:$0xff]  ;;  %1093 = vmatpush.msra.mxu2 %v1039_v56  ;;  %v1037_v58 = vld [vmem:[#allocation4 + $0x368] sm:$0xff]  ;;  %v928_v44 = vld [vmem:[#allocation4 + $0x210] sm:$0xff] }
 0x235   :  { %852 = vmatpush.msrb.mxu0 %v783_v49  ;;  %1064 = vmatpush.msra.mxu1 %v1038_v55  ;;  %v951_v17 = vld [vmem:[#allocation4 + $0x2c8] sm:$0xff]  ;;  %v930_v42 = vld [vmem:[#allocation4 + $0x220] sm:$0xff]  ;;  %v929_v47 = vld [vmem:[#allocation4 + $0x218] sm:$0xff] }
 0x236   :  { %633 = vrot.lane.b32.xlu2 %v618_v50, %s1873_s6  ;;  %887 = vmatmul.f32.gmra.mxu1 %v618_v50  ;;  %v2110_v2 = vperm.slane %v606_v61, %v2051_v36  ;;  %v651_v4 = vrot.slane %v622_v60, 1  ;;  %v1032_v61 = vld [vmem:[#allocation4 + $0x340] sm:$0xff]  ;;  %v931_v43 = vld [vmem:[#allocation4 + $0x228] sm:$0xff] }
 0x237   :  { %916 = vmatmul.f32.gmra.mxu2 %v618_v50  ;;  %635 = vrot.lane.b32.xlu0 %v622_v60, %s1873_s6  ;;  %v780_v50 = vld [vmem:[#allocation4 + $0x110] sm:$0xff]  ;;  %v927_v49 = vld [vmem:[#allocation4 + $0x208] sm:$0xff] }
 0x238   :  { %637 = vrot.lane.b32.xlu1 %v2110_v2, %s1873_s6  ;;  %v653_v13 = vrot.slane %v2110_v2, 1  ;;  %v652_v21 = vsel %vm209_vm3, %v649_v0, %v651_v4  ;;  %823 = vmatpush.msra.mxu3 %v782_v48  ;;  %v1030_v0 = vld [vmem:[#allocation4 + $0x330] sm:$0xff]  ;;  %v926_v48 = vld [vmem:[#allocation4 + $0x200] sm:$0xff] }
 0x239   :  { %v2147_v28 = vmul.f32 %v1728_v23, %v652_v21  ;;  %853 = vmatpush.msrb.mxu0 %v781_v51  ;;  %1065 = vmatpush.msra.mxu1 %v1036_v57  ;;  %v947_v21 = vld [vmem:[#allocation4 + $0x2a8] sm:$0xff]  ;;  %v944_v23 = vld [vmem:[#allocation4 + $0x290] sm:$0xff] }
 0x23a   :  { %v654_v22 = vsel %vm209_vm3, %v651_v4, %v653_v13  ;;  %v659_v39 = vsel %vm209_vm3, %v653_v13, 0.0  ;;  %824 = vmatpush.msra.mxu3 %v780_v50  ;;  %1094 = vmatpush.msra.mxu2 %v1037_v58  ;;  %v1026_v4 = vld [vmem:[#allocation4 + $0x310] sm:$0xff]  ;;  %v955_v13 = vld [vmem:[#allocation4 + $0x2e8] sm:$0xff] }
 0x23b   :  { %v2151_v30 = vmul.f32 %v1729_v26, %v654_v22  ;;  %v2159_v46 = vmul.f32 %v1730_v40, %v659_v39  ;;  %854 = vmatpush.msrb.mxu0 %v779_v54  ;;  %1066 = vmatpush.msra.mxu1 %v1034_v59  ;;  %v940_v26 = vld [vmem:[#allocation4 + $0x270] sm:$0xff]  ;;  %v1458_v57 = vld [vmem:[%s2648_s9 + $0x68] sm:$0xff]  ;;  %v1456_v59 = vld [vmem:[%s2648_s9 + $0x58] sm:$0xff] }
 0x23c   :  { %825 = vmatpush.msra.mxu3 %v778_v53  ;;  %v932_v40 = vld [vmem:[#allocation4 + $0x230] sm:$0xff] }
 0x23d   :  { %1067 = vmatpush.msra.mxu1 %v1032_v61  ;;  %987 = vmatpush.msra.mxu0 %v957_v11  ;;  %v1455_v61 = vld [vmem:[%s2648_s9 + $0x50] sm:$0xff] }
 0x23e   :  { %730 = vrot.lane.b32.xlu2 %v2145_v27, %s1873_s6  ;;  %890 = vmatmul.f32.gmra.mxu1 %v622_v60  ;;  %v2257_v11 = vld [vmem:[%s2648_s9 + $0x150] sm:$0xff] }
 0x23f   :  { %919 = vmatmul.f32.gmra.mxu2 %v622_v60  ;;  %732 = vrot.lane.b32.xlu0 %v2147_v28, %s1873_s6  ;;  %v1035_v60 = vld [vmem:[#allocation4 + $0x358] sm:$0xff] }
 0x240   :  { %734 = vrot.lane.b32.xlu1 %v2151_v30, %s1873_s6  ;;  %1095 = vmatpush.msra.mxu2 %v1035_v60  ;;  %v2215_v60 = vld [vmem:[%s2648_s9 + $0x170] sm:$0xff] }
 0x241   :  { %1068 = vmatpush.msra.mxu1 %v1030_v0  ;;  %958 = vmatpush.msrb.mxu3 %v956_v10 }
 0x242   :  { %1096 = vmatpush.msra.mxu2 %v1033_v63  ;;  %988 = vmatpush.msra.mxu0 %v955_v13  ;;  %v2266_v13 = vld [vmem:[%s2648_s9 + $0x148] sm:$0xff] }
 0x243   :  { %959 = vmatpush.msrb.mxu3 %v954_v12  ;;  %v1451_v12 = vld [vmem:[%s2648_s9 + $0x30] sm:$0xff] }
 0x244   :  { %1097 = vmatpush.msra.mxu2 %v1031_v1  ;;  %989 = vmatpush.msra.mxu0 %v953_v15  ;;  %v2228_v1 = vld [vmem:[%s2648_s9 + $0x168] sm:$0xff] }
 0x245   :  { %960 = vmatpush.msrb.mxu3 %v952_v14  ;;  %v1450_v14 = vld [vmem:[%s2648_s9 + $0x28] sm:$0xff] }
 0x246   :  { %736 = vrot.lane.b32.xlu2 %v2159_v46, %s1873_s6  ;;  %893 = vmatmul.f32.gmra.mxu1 %v2110_v2 }
 0x247   :  { %922 = vmatmul.f32.gmra.mxu2 %v2110_v2  ;;  %v1028_v2 = vld [vmem:[#allocation4 + $0x320] sm:$0xff]  ;;  %961 = vmatpush.msrb.mxu3 %v950_v16 }
 0x248   :  { %1069 = vmatpush.msra.mxu1 %v1028_v2  ;;  %1098 = vmatpush.msra.mxu2 %v1029_v3  ;;  %v1454_v2 = vld [vmem:[%s2648_s9 + $0x48] sm:$0xff]  ;;  %v2237_v3 = vld [vmem:[%s2648_s9 + $0x160] sm:$0xff] }
 0x249   :  { %990 = vmatpush.msra.mxu0 %v951_v17  ;;  %962 = vmatpush.msrb.mxu3 %v948_v18  ;;  %v2277_v17 = vld [vmem:[%s2648_s9 + $0x140] sm:$0xff] }
 0x24a   :  { %1070 = vmatpush.msra.mxu1 %v1026_v4  ;;  %1099 = vmatpush.msra.mxu2 %v1027_v6  ;;  %v1453_v4 = vld [vmem:[%s2648_s9 + $0x40] sm:$0xff] }
 0x24b   :  { %991 = vmatpush.msra.mxu0 %v949_v19  ;;  %963 = vmatpush.msrb.mxu3 %v946_v20  ;;  %v1449_v18 = vld [vmem:[%s2648_s9 + $0x20] sm:$0xff]  ;;  %v2286_v19 = vld [vmem:[%s2648_s9 + $0x138] sm:$0xff] }
 0x24c   :  { %1071 = vmatpush.msra.mxu1 %v1024_v8  ;;  %1100 = vmatpush.msra.mxu2 %v1025_v9  ;;  %v2248_v8 = vld [vmem:[%s2648_s9 + $0x158] sm:$0xff] }
 0x24d   :  { %992 = vmatpush.msra.mxu0 %v947_v21  ;;  %964 = vmatpush.msrb.mxu3 %v944_v23  ;;  %v1452_v9 = vld [vmem:[%s2648_s9 + $0x38] sm:$0xff]  ;;  %v2295_v23 = vld [vmem:[%s2648_s9 + $0x130] sm:$0xff] }
 0x24e   :  { %v1448_v20 = vld [vmem:[%s2648_s9 + $0x18] sm:$0xff] }
 0x24f   :  { %993 = vmatpush.msra.mxu0 %v945_v24  ;;  %965 = vmatpush.msrb.mxu3 %v942_v25  ;;  %v1447_v24 = vld [vmem:[%s2648_s9 + $0x10] sm:$0xff] }
 0x251   :  { %994 = vmatpush.msra.mxu0 %v943_v7  ;;  %966 = vmatpush.msrb.mxu3 %v940_v26  ;;  %v2304_v7 = vld [vmem:[%s2648_s9 + $0x128] sm:$0xff] }
 0x253   :  { %995 = vmatpush.msra.mxu0 %v941_v29  ;;  %967 = vmatpush.msrb.mxu3 %v938_v31  ;;  %v2313_v29 = vld [vmem:[%s2648_s9 + $0x120] sm:$0xff] }
 0x254   :  { %v1445_v31 = vld [vmem:[%s2648_s9] sm:$0xff] }
 0x255   :  { %996 = vmatpush.msra.mxu0 %v939_v32  ;;  %968 = vmatpush.msrb.mxu3 %v936_v34  ;;  %v2324_v34 = vld [vmem:[%s2648_s9 + $0x118] sm:$0xff] }
 0x257   :  { %997 = vmatpush.msra.mxu0 %v937_v35  ;;  %969 = vmatpush.msrb.mxu3 %v934_v37  ;;  %v2330_v35 = vld [vmem:[%s2648_s9 + $0x110] sm:$0xff] }
 0x259   :  { %998 = vmatpush.msra.mxu0 %v935_v38  ;;  %970 = vmatpush.msrb.mxu3 %v932_v40 }
 0x25b   :  { %999 = vmatpush.msra.mxu0 %v933_v41  ;;  %971 = vmatpush.msrb.mxu3 %v930_v42  ;;  %v2346_v41 = vld [vmem:[%s2648_s9 + $0x100] sm:$0xff] }
 0x25d   :  { %1000 = vmatpush.msra.mxu0 %v931_v43  ;;  %972 = vmatpush.msrb.mxu3 %v928_v44 }
 0x25f   :  { %1001 = vmatpush.msra.mxu0 %v929_v47  ;;  %973 = vmatpush.msrb.mxu3 %v926_v48  ;;  %v1122_v47 = vld [vmem:[%s2647_s8] sm:$0x3]  ;;  %s1874_s8 = smov 112  }
 0x261   :  { %1002 = vmatpush.msra.mxu0 %v927_v49 }
 0x288   :  { %v632_v22 = vpop.permute.xlu2 %631 }
 0x289   :  { %1731 = vmatmul.msk.f32.vlgmr.msra.gmra.mxu3 %vm643_vm10, %v632_v22  ;;  %1735 = vmatmul.msk.f32.vlgmr.msrb.gmra.mxu0 %vm643_vm10, %v632_v22  ;;  %v1446_v22 = vld [vmem:[%s2648_s9 + $0x8] sm:$0xff] }
 0x290   :  { %v634_v39 = vpop.permute.xlu2 %633 }
 0x291   :  { %1732 = vmatmul.msk.f32.gmra.mxu3 %vm643_vm10, %v634_v39  ;;  %1736 = vmatmul.msk.f32.gmra.mxu0 %vm643_vm10, %v634_v39  ;;  %v2338_v39 = vld [vmem:[%s2648_s9 + $0x108] sm:$0xff] }
 0x298   :  { %v731_v50 = vpop.permute.xlu2 %730 }
 0x299   :  { %1739 = vmatmul.msk.f32.vlgmr.msra.gmra.mxu1 %vm643_vm10, %v731_v50  ;;  %1743 = vmatmul.msk.f32.vlgmr.msra.gmra.mxu2 %vm643_vm10, %v731_v50 }
 0x2a0   :  { %v737_v56 = vpop.permute.xlu2 %736 }
 0x2a9   :  { %v636_v51 = vpop.permute.xlu0 %635 }
 0x2aa   :  { %1733 = vmatmul.msk.f32.gmra.mxu3 %vm643_vm10, %v636_v51  ;;  %1737 = vmatmul.msk.f32.gmra.mxu0 %vm643_vm10, %v636_v51  ;;  %v638_v53 = vpop.permute.xlu1 %637  ;;  %v2358_v51 = vperm.slane %v1122_v47, 1 }
 0x2ab   :  { %v2221_v63 = vpop.f32.mrf.mxu1 }
 0x2b1   :  { %v733_v54 = vpop.permute.xlu0 %732 }
 0x2b2   :  { %1734 = vmatmul.msk.f32.gmra.mxu3 %vm643_vm10, %v638_v53  ;;  %1738 = vmatmul.msk.f32.gmra.mxu0 %vm643_vm10, %v638_v53  ;;  %v735_v55 = vpop.permute.xlu1 %734  ;;  %v2198_v58 = vpop.f32.mrf.mxu2 }
 0x2b3   :  { %1740 = vmatmul.msk.f32.gmra.mxu1 %vm643_vm10, %v733_v54  ;;  %1744 = vmatmul.msk.f32.gmra.mxu2 %vm643_vm10, %v733_v54  ;;  %v2272_v15 = vpop.f32.mrf.mxu1 }
 0x2ba   :  { %974 = vmatmul.f32.vlgmr.msrb.gmra.mxu3 %v2145_v27  ;;  %1003 = vmatmul.f32.vlgmr.msra.gmra.mxu0 %v2145_v27  ;;  %v1460_v27 = vld [vmem:[%s2648_s9 + $0x78] sm:$0xff]  ;;  %v2243_v6 = vpop.f32.mrf.mxu2 }
 0x2bb   :  { %1741 = vmatmul.msk.f32.gmra.mxu1 %vm643_vm10, %v735_v55  ;;  %1745 = vmatmul.msk.f32.gmra.mxu2 %vm643_vm10, %v735_v55  ;;  %v2319_v32 = vpop.f32.mrf.mxu1 }
 0x2bc   :  { %1518 = vmatpush.msrb.mxu0 %v1460_v27 }
 0x2c2   :  { %977 = vmatmul.f32.gmra.mxu3 %v2147_v28  ;;  %1006 = vmatmul.f32.gmra.mxu0 %v2147_v28  ;;  %v1459_v28 = vld [vmem:[%s2648_s9 + $0x70] sm:$0xff]  ;;  %v920_v21 = vpop.f32.mrf.mxu2 }
 0x2c3   :  { %1742 = vmatmul.msk.f32.gmra.mxu1 %vm643_vm10, %v737_v56  ;;  %1746 = vmatmul.msk.f32.gmra.mxu2 %vm643_vm10, %v737_v56  ;;  %v2349_v42 = vpop.f32.mrf.mxu1 }
 0x2c4   :  { %1519 = vmatpush.msrb.mxu0 %v1459_v28 }
 0x2c6   :  { %1520 = vmatpush.msrb.mxu0 %v1458_v57 }
 0x2ca   :  { %980 = vmatmul.f32.gmra.mxu3 %v2151_v30  ;;  %1009 = vmatmul.f32.gmra.mxu0 %v2151_v30  ;;  %v1457_v30 = vld [vmem:[%s2648_s9 + $0x60] sm:$0xff]  ;;  %v2333_v37 = vpop.f32.mrf.mxu2 }
 0x2cb   :  { %1521 = vmatpush.msrb.mxu0 %v1457_v30 }
 0x2cd   :  { %1522 = vmatpush.msrb.mxu0 %v1456_v59  ;;  %v2363_v59 = vperm.slane %v1122_v47, 0 }
 0x2cf   :  { %1523 = vmatpush.msrb.mxu0 %v1455_v61 }
 0x2d1   :  { %1524 = vmatpush.msrb.mxu0 %v1454_v2 }
 0x2d2   :  { %983 = vmatmul.f32.gmra.mxu3 %v2159_v46  ;;  %1012 = vmatmul.f32.gmra.mxu0 %v2159_v46  ;;  %v2206_v46 = vld [vmem:[%s2648_s9 + $0x178] sm:$0xff] }
 0x2d3   :  { %1575 = vmatpush.msrb.mxu1 %v2206_v46  ;;  %1525 = vmatpush.msrb.mxu0 %v1453_v4 }
 0x2d5   :  { %1576 = vmatpush.msrb.mxu1 %v2215_v60  ;;  %1526 = vmatpush.msrb.mxu0 %v1452_v9 }
 0x2d7   :  { %1577 = vmatpush.msrb.mxu1 %v2228_v1  ;;  %1527 = vmatpush.msrb.mxu0 %v1451_v12 }
 0x2d9   :  { %1578 = vmatpush.msrb.mxu1 %v2237_v3  ;;  %1528 = vmatpush.msrb.mxu0 %v1450_v14  ;;  %v1281_v14 = vand.u32 7, %v2049_v33 }
 0x2db   :  { %1579 = vmatpush.msrb.mxu1 %v2248_v8  ;;  %1529 = vmatpush.msrb.mxu0 %v1449_v18  ;;  %vm1373_vm11 = vcmp.ne.s32.totalorder %v1281_v14, 7 }
 0x2dd   :  { %1580 = vmatpush.msrb.mxu1 %v2257_v11  ;;  %1530 = vmatpush.msrb.mxu0 %v1448_v20 }
 0x2df   :  { %1581 = vmatpush.msrb.mxu1 %v2266_v13  ;;  %1531 = vmatpush.msrb.mxu0 %v1447_v24 }
 0x2e1   :  { %1582 = vmatpush.msrb.mxu1 %v2277_v17  ;;  %1532 = vmatpush.msrb.mxu0 %v1446_v22 }
 0x2e3   :  { %1583 = vmatpush.msrb.mxu1 %v2286_v19  ;;  %1533 = vmatpush.msrb.mxu0 %v1445_v31 }
 0x2e5   :  { %1584 = vmatpush.msrb.mxu1 %v2295_v23 }
 0x2e7   :  { %1585 = vmatpush.msrb.mxu1 %v2304_v7 }
 0x2e9   :  { %1586 = vmatpush.msrb.mxu1 %v2313_v29 }
 0x2eb   :  { %1587 = vmatpush.msrb.mxu1 %v2324_v34 }
 0x2ed   :  { %1588 = vmatpush.msrb.mxu1 %v2330_v35 }
 0x2ef   :  { %1589 = vmatpush.msrb.mxu1 %v2338_v39 }
 0x2f1   :  { %1590 = vmatpush.msrb.mxu1 %v2346_v41 }
 0x306   :  { %v2223_v0 = vpop.f32.mrf.mxu0 }
 0x307   :  { %v915_v48 = vadd.f32 %v2198_v58, %v2223_v0 }
 0x30c   :  { %v827_v10 = vpop.f32.mrf.mxu3 }
 0x30d   :  { %v886_v55 = vadd.f32 %v2221_v63, %v827_v10 }
 0x30e   :  { %v859_v16 = vpop.f32.mrf.mxu0 }
 0x30f   :  { %v918_v57 = vadd.f32 %v2243_v6, %v859_v16 }
 0x314   :  { %v830_v25 = vpop.f32.mrf.mxu3 }
 0x315   :  { %v889_v63 = vadd.f32 %v2272_v15, %v830_v25 }
 0x316   :  { %v1073_v54 = vpop.f32.mrf.mxu1 }
 0x31c   :  { %v1102_v43 = vpop.f32.mrf.mxu2 }
 0x327   :  { %v862_v26 = vpop.f32.mrf.mxu0 }
 0x328   :  { %v921_v16 = vadd.f32 %v920_v21, %v862_v26 }
 0x32d   :  { %v833_v38 = vpop.f32.mrf.mxu3 }
 0x32f   :  { %v2341_v40 = vpop.f32.mrf.mxu0 }
 0x330   :  { %v1076_v12 = vpop.f32.mrf.mxu1 }
 0x335   :  { %v2351_v44 = vpop.f32.mrf.mxu3 }
 0x336   :  { %v1105_v27 = vpop.f32.mrf.mxu2 }
 0x337   :  { %v1004_v49 = vpop.f32.mrf.mxu0 }
 0x338   :  { %v1017_v50 = vadd.f32 %v1004_v49, %v915_v48 }
 0x33a   :  { %v1115_v53 = vadd.f32 %v1102_v43, %v1017_v50 }
 0x33c   :  { %v1129_v56 = vadd.f32 %v2358_v51, %v1115_v53 }
 0x33d   :  { %v975_v28 = vpop.f32.mrf.mxu3 }
 0x33e   :  { %v1016_v30 = vadd.f32 %v975_v28, %v886_v55  ;;  %v1137_v2 = vmax.f32 %v1129_v56, 0.0  ;;  %v1108_v43 = vpop.f32.mrf.mxu2  ;;  %v1295_v28 = vand.u32 7, %v2099_v45 }
 0x33f   :  { %v1007_v61 = vpop.f32.mrf.mxu0 }
 0x340   :  { %v1114_v58 = vadd.f32 %v1073_v54, %v1016_v30  ;;  %v1019_v0 = vadd.f32 %v1007_v61, %v918_v57  ;;  %v1152_v10 = vrot.slane %v1137_v2, 4  ;;  %v1747_v54 = vsel %vm1373_vm11, 1.0, %v1872_v62 }
 0x341   :  { %v892_v57 = vadd.f32 %v2319_v32, %v833_v38  ;;  %vm2389_vm13 = vcmp.ne.s32.totalorder %v1295_v28, 7 }
 0x342   :  { %v1128_v4 = vadd.f32 %v2363_v59, %v1114_v58  ;;  %v1117_v9 = vadd.f32 %v1105_v27, %v1019_v0  ;;  %v1288_v27 = vand.u32 7, %v2062_v52  ;;  %v1079_v58 = vpop.f32.mrf.mxu1 }
 0x344   :  { %v1136_v18 = vmax.f32 %v1128_v4, 0.0  ;;  %v1131_v20 = vadd.f32 %v2358_v51, %v1117_v9  ;;  %v924_v9 = vadd.f32 %v2333_v37, %v2341_v40  ;;  %vm1374_vm12 = vcmp.ne.s32.totalorder %v1288_v27, 7 }
 0x345   :  { %v978_v6 = vpop.f32.mrf.mxu3 }
 0x346   :  { %v1018_v24 = vadd.f32 %v978_v6, %v889_v63  ;;  %v1156_v22 = vsel %vm184_vm1, %v1136_v18, %v1152_v10  ;;  %v1157_v31 = vsel %vm184_vm1, %v1152_v10, %v1136_v18  ;;  %v1139_v50 = vmax.f32 %v1131_v20, 0.0  ;;  %v1111_v40 = vpop.f32.mrf.mxu2 }
 0x347   :  { %v1010_v47 = vpop.f32.mrf.mxu0  ;;  %v1179_v48 = vperm.slane %v1156_v22, %v2051_v36  ;;  %v1158_v49 = vrot.slane %v1157_v31, 4  ;;  %v1748_v31 = vsel %vm1374_vm12, 1.0, %v1872_v62 }
 0x348   :  { %v1116_v53 = vadd.f32 %v1076_v12, %v1018_v24  ;;  %v1021_v15 = vadd.f32 %v1010_v47, %v921_v16  ;;  %v1153_v30 = vrot.slane %v1139_v50, 4 }
 0x349   :  { %1216 = vrot.lane.b32.xlu0 %v1179_v48, %s1874_s8  ;;  %1534 = vmatmul.f32.vlgmr.msrb.gmra.mxu0 %v1179_v48  ;;  %v1183_v21 = vperm.slane %v1158_v49, %v2051_v36  ;;  %v1249_v55 = vrot.slane %v1179_v48, 1  ;;  %v1749_v48 = vsel %vm2389_vm13, 1.0, %v1872_v62  ;;  %v1273_v49 = vadd.s32 32, %v2049_v33 }
 0x34a   :  { %v1130_v25 = vadd.f32 %v2363_v59, %v1116_v53  ;;  %v1119_v26 = vadd.f32 %v1108_v43, %v1021_v15  ;;  %v895_v43 = vadd.f32 %v2349_v42, %v2351_v44 }
 0x34b   :  { %v1250_v56 = vrot.slane %v1183_v21, 1  ;;  %1218 = vrot.lane.b32.xlu1 %v1183_v21, %s1874_s8 }
 0x34c   :  { %v1138_v61 = vmax.f32 %v1130_v25, 0.0  ;;  %v1133_v2 = vadd.f32 %v2358_v51, %v1119_v26  ;;  %v1302_v26 = vand.u32 7, %v2117_v5 }
 0x34d   :  { %v981_v0 = vpop.f32.mrf.mxu3  ;;  %v1251_v4 = vsel %vm209_vm3, %v1249_v55, %v1250_v56 }
 0x34e   :  { %v1020_v12 = vadd.f32 %v981_v0, %v892_v57  ;;  %v2384_v14 = vmul.f32 %v1747_v54, %v1251_v4  ;;  %v1159_v52 = vsel %vm184_vm1, %v1138_v61, %v1153_v30  ;;  %v1160_v32 = vsel %vm184_vm1, %v1153_v30, %v1138_v61 }
 0x34f   :  { %v1013_v63 = vpop.f32.mrf.mxu0  ;;  %v1187_v45 = vperm.slane %v1159_v52, %v2051_v36  ;;  %v1141_v10 = vmax.f32 %v1133_v2, 0.0  ;;  %v1161_v37 = vrot.slane %v1160_v32, 4  ;;  %v1309_v57 = vand.u32 7, %v1273_v49 }
 0x350   :  { %v1118_v18 = vadd.f32 %v1079_v58, %v1020_v12  ;;  %v1023_v20 = vadd.f32 %v1013_v63, %v924_v9  ;;  %1591 = vmatmul.f32.vlgmr.msrb.gmra.mxu1 %v2384_v14  ;;  %v1274_v58 = vadd.s32 40, %v2049_v33  ;;  %vm1376_vm14 = vcmp.ne.s32.totalorder %v1302_v26, 7  ;;  %v1636_v26 = vld [vmem:[%s2648_s9 + $0x1e0] sm:$0xff] }
 0x351   :  { %1537 = vmatmul.f32.gmra.mxu0 %v1183_v21  ;;  %1220 = vrot.lane.b32.xlu2 %v1187_v45, %s1874_s8  ;;  %v1252_v6 = vrot.slane %v1187_v45, 1  ;;  %v1191_v22 = vperm.slane %v1161_v37, %v2051_v36  ;;  %v1154_v50 = vrot.slane %v1141_v10, 4  ;;  %vm1377_vm15 = vcmp.ne.s32.totalorder %v1309_v57, 7 }
 0x352   :  { %v1132_v16 = vadd.f32 %v2363_v59, %v1118_v18  ;;  %v1121_v24 = vadd.f32 %v1111_v40, %v1023_v20  ;;  %v1275_v63 = vadd.s32 48, %v2049_v33  ;;  %v1316_v32 = vand.u32 7, %v1274_v58  ;;  %v1632_v58 = vld [vmem:[%s2648_s9 + $0x1c0] sm:$0xff] }
 0x353   :  { %v1253_v47 = vsel %vm209_vm3, %v1250_v56, %v1252_v6  ;;  %1222 = vrot.lane.b32.xlu0 %v1191_v22, %s1874_s8  ;;  %v1254_v21 = vrot.slane %v1191_v22, 1  ;;  %v1082_v56 = vpop.f32.mrf.mxu1  ;;  %v1751_v37 = vsel %vm1377_vm15, 1.0, %v1872_v62 }
 0x354   :  { %v1140_v53 = vmax.f32 %v1132_v16, 0.0  ;;  %v1135_v15 = vadd.f32 %v2358_v51, %v1121_v24  ;;  %v2408_v42 = vmul.f32 %v1748_v31, %v1253_v47  ;;  %v1323_v16 = vand.u32 7, %v1275_v63  ;;  %v1639_v47 = vld [vmem:[%s2648_s9 + $0x1f8] sm:$0xff] }
 0x355   :  { %v984_v25 = vpop.f32.mrf.mxu3  ;;  %v1255_v44 = vsel %vm209_vm3, %v1252_v6, %v1254_v21  ;;  %vm1378_vm0 = vcmp.ne.s32.totalorder %v1316_v32, 7  ;;  %1787 = vmatpush.msrb.mxu2 %v1639_v47  ;;  %1640 = vmatpush.msra.mxu0 %v1639_v47  ;;  %v1627_v63 = vld [vmem:[%s2648_s9 + $0x198] sm:$0xff]  ;;  %v1466_v32 = vld [vmem:[%s2648_s9 + $0xa8] sm:$0xff] }
 0x356   :  { %v1022_v54 = vadd.f32 %v984_v25, %v895_v43  ;;  %v1162_v55 = vsel %vm184_vm1, %v1140_v53, %v1154_v50  ;;  %v1399_v27 = vmul.f32 %v1749_v48, %v1255_v44  ;;  %v1163_v51 = vsel %vm184_vm1, %v1154_v50, %v1140_v53  ;;  %v1638_v48 = vld [vmem:[%s2648_s9 + $0x1f0] sm:$0xff] }
 0x357   :  { %v2413_v28 = vperm.slane %v1162_v55, %v2051_v36  ;;  %v1143_v30 = vmax.f32 %v1135_v15, 0.0  ;;  %v1164_v5 = vrot.slane %v1163_v51, 4  ;;  %v1276_v43 = vadd.s32 56, %v2049_v33  ;;  %v1637_v33 = vld [vmem:[%s2648_s9 + $0x1e8] sm:$0xff]  ;;  %v1475_v50 = vld [vmem:[%s2648_s9 + $0xf0] sm:$0xff]  ;;  %1788 = vmatpush.msrb.mxu2 %v1638_v48  ;;  %1641 = vmatpush.msra.mxu0 %v1638_v48 }
 0x358   :  { %v1120_v61 = vadd.f32 %v1082_v56, %v1022_v54  ;;  %1594 = vmatmul.f32.gmra.mxu1 %v2408_v42  ;;  %v1752_v15 = vsel %vm1378_vm0, 1.0, %v1872_v62  ;;  %v1635_v56 = vld [vmem:[%s2648_s9 + $0x1d8] sm:$0xff]  ;;  %v1634_v51 = vld [vmem:[%s2648_s9 + $0x1d0] sm:$0xff] }
 0x359   :  { %1540 = vmatmul.f32.gmra.mxu0 %v1187_v45  ;;  %1417 = vrot.lane.b32.xlu2 %v1399_v27, %s1874_s8  ;;  %v1256_v2 = vrot.slane %v2413_v28, 1  ;;  %v2424_v4 = vperm.slane %v1164_v5, %v2051_v36  ;;  %v1155_v9 = vrot.slane %v1143_v30, 4  ;;  %v1330_v25 = vand.u32 7, %v1276_v43  ;;  %v1472_v30 = vld [vmem:[%s2648_s9 + $0xd8] sm:$0xff] }
 0x35a   :  { %v1134_v0 = vadd.f32 %v2363_v59, %v1120_v61  ;;  %1224 = vrot.lane.b32.xlu1 %v2413_v28, %s1874_s8  ;;  %v1750_v59 = vsel %vm1376_vm14, 1.0, %v1872_v62  ;;  %1789 = vmatpush.msrb.mxu2 %v1637_v33 }
 0x35b   :  { %1226 = vrot.lane.b32.xlu0 %v2424_v4, %s1874_s8  ;;  %v1258_v52 = vrot.slane %v2424_v4, 1  ;;  %v1257_v45 = vsel %vm209_vm3, %v1254_v21, %v1256_v2  ;;  %v1474_v21 = vld [vmem:[%s2648_s9 + $0xe8] sm:$0xff]  ;;  %1642 = vmatpush.msra.mxu0 %v1637_v33  ;;  %vm1380_vm2 = vcmp.ne.s32.totalorder %v1330_v25, 7 }
 0x35c   :  { %v1142_v12 = vmax.f32 %v1134_v0, 0.0  ;;  %v1400_v6 = vmul.f32 %v1750_v59, %v1257_v45  ;;  %1790 = vmatpush.msrb.mxu2 %v1636_v26  ;;  %v1754_v5 = vsel %vm1380_vm2, 1.0, %v1872_v62  ;;  %v1467_v45 = vld [vmem:[%s2648_s9 + $0xb0] sm:$0xff] }
 0x35d   :  { %v1259_v20 = vsel %vm209_vm3, %v1256_v2, %v1258_v52  ;;  %1643 = vmatpush.msra.mxu0 %v1636_v26  ;;  %v1471_v2 = vld [vmem:[%s2648_s9 + $0xd0] sm:$0xff] }
 0x35e   :  { %v1165_v38 = vsel %vm184_vm1, %v1142_v12, %v1155_v9  ;;  %v1166_v10 = vsel %vm184_vm1, %v1155_v9, %v1142_v12  ;;  %vm1379_vm1 = vcmp.ne.s32.totalorder %v1323_v16, 7  ;;  %1791 = vmatpush.msrb.mxu2 %v1635_v56  ;;  %v1631_v9 = vld [vmem:[%s2648_s9 + $0x1b8] sm:$0xff]  ;;  %v1630_v12 = vld [vmem:[%s2648_s9 + $0x1b0] sm:$0xff] }
 0x35f   :  { %v2435_v18 = vperm.slane %v1165_v38, %v2051_v36  ;;  %v1167_v40 = vrot.slane %v1166_v10, 4  ;;  %v1753_v55 = vsel %vm1379_vm1, 1.0, %v1872_v62  ;;  %1644 = vmatpush.msra.mxu0 %v1635_v56  ;;  %v1470_v62 = vld [vmem:[%s2648_s9 + $0xc8] sm:$0xff]  ;;  %v1626_v59 = vld [vmem:[%s2648_s9 + $0x190] sm:$0xff]  ;;  %v1465_v10 = vld [vmem:[%s2648_s9 + $0xa0] sm:$0xff] }
 0x360   :  { %1597 = vmatmul.f32.gmra.mxu1 %v1399_v27  ;;  %v1473_v27 = vld [vmem:[%s2648_s9 + $0xe0] sm:$0xff]  ;;  %1792 = vmatpush.msrb.mxu2 %v1634_v51  ;;  %v1625_v38 = vld [vmem:[%s2648_s9 + $0x188] sm:$0xff] }
 0x361   :  { %1543 = vmatmul.f32.gmra.mxu0 %v1191_v22  ;;  %1228 = vrot.lane.b32.xlu2 %v2435_v18, %s1874_s8  ;;  %v1260_v24 = vrot.slane %v2435_v18, 1  ;;  %v2443_v31 = vperm.slane %v1167_v40, %v2051_v36  ;;  %v1401_v22 = vmul.f32 %v1751_v37, %v1259_v20  ;;  %v1476_v36 = vld [vmem:[%s2648_s9 + $0xf8] sm:$0xff]  ;;  %v1463_v37 = vld [vmem:[%s2648_s9 + $0x90] sm:$0xff]  ;;  %v1462_v40 = vld [vmem:[%s2648_s9 + $0x88] sm:$0xff] }
 0x362   :  { %1419 = vrot.lane.b32.xlu1 %v1400_v6, %s1874_s8  ;;  %1477 = vmatpush.msra.mxu3 %v1476_v36  ;;  %v1464_v20 = vld [vmem:[%s2648_s9 + $0x98] sm:$0xff] }
 0x363   :  { %v1262_v49 = vrot.slane %v2443_v31, 1  ;;  %1421 = vrot.lane.b32.xlu0 %v1401_v22, %s1874_s8  ;;  %v1261_v53 = vsel %vm209_vm3, %v1258_v52, %v1260_v24  ;;  %1645 = vmatpush.msra.mxu0 %v1634_v51  ;;  %v1469_v52 = vld [vmem:[%s2648_s9 + $0xc0] sm:$0xff] }
 0x364   :  { %1478 = vmatpush.msra.mxu3 %v1475_v50  ;;  %v1402_v54 = vmul.f32 %v1752_v15, %v1261_v53 }
 0x365   :  { %v1263_v44 = vsel %vm209_vm3, %v1260_v24, %v1262_v49  ;;  %v1272_v61 = vsel %vm209_vm3, %v1262_v49, 0.0  ;;  %vm1240_vm3 = vcmask 916480  }
 0x366   :  { %1479 = vmatpush.msra.mxu3 %v1474_v21  ;;  %v2487_v57 = vmul.f32 %v1753_v55, %v1263_v44  ;;  %v2505_v0 = vmul.f32 %v1754_v5, %v1272_v61 }
 0x368   :  { %1600 = vmatmul.f32.gmra.mxu1 %v1400_v6  ;;  %1480 = vmatpush.msra.mxu3 %v1473_v27  ;;  %v1461_v6 = vld [vmem:[%s2648_s9 + $0x80] sm:$0xff] }
 0x369   :  { %1546 = vmatmul.f32.gmra.mxu0 %v2413_v28  ;;  %1423 = vrot.lane.b32.xlu2 %v1402_v54, %s1874_s8  ;;  %v1633_v28 = vld [vmem:[%s2648_s9 + $0x1c8] sm:$0xff] }
 0x36a   :  { %1230 = vrot.lane.b32.xlu1 %v2443_v31, %s1874_s8  ;;  %1481 = vmatpush.msra.mxu3 %v1472_v30 }
 0x36b   :  { %1425 = vrot.lane.b32.xlu0 %v2487_v57, %s1874_s8  ;;  %1793 = vmatpush.msrb.mxu2 %v1633_v28 }
 0x36c   :  { %1482 = vmatpush.msra.mxu3 %v1471_v2  ;;  %1646 = vmatpush.msra.mxu0 %v1633_v28 }
 0x36d   :  { %1794 = vmatpush.msrb.mxu2 %v1632_v58 }
 0x36e   :  { %1483 = vmatpush.msra.mxu3 %v1470_v62  ;;  %1647 = vmatpush.msra.mxu0 %v1632_v58 }
 0x36f   :  { %1795 = vmatpush.msrb.mxu2 %v1631_v9 }
 0x370   :  { %1603 = vmatmul.f32.gmra.mxu1 %v1401_v22  ;;  %1484 = vmatpush.msra.mxu3 %v1469_v52 }
 0x371   :  { %1549 = vmatmul.f32.gmra.mxu0 %v2424_v4  ;;  %1427 = vrot.lane.b32.xlu2 %v2505_v0, %s1874_s8  ;;  %v1629_v4 = vld [vmem:[%s2648_s9 + $0x1a8] sm:$0xff] }
 0x372   :  { %1413 = vrot.lane.b32.xlu1 %v2384_v14, %s1874_s8  ;;  %1796 = vmatpush.msrb.mxu2 %v1630_v12  ;;  %v1628_v14 = vld [vmem:[%s2648_s9 + $0x1a0] sm:$0xff] }
 0x373   :  { %1415 = vrot.lane.b32.xlu0 %v2408_v42, %s1874_s8  ;;  %1648 = vmatpush.msra.mxu0 %v1631_v9  ;;  %v1468_v42 = vld [vmem:[%s2648_s9 + $0xb8] sm:$0xff] }
 0x374   :  { %1797 = vmatpush.msrb.mxu2 %v1629_v4  ;;  %1485 = vmatpush.msra.mxu3 %v1468_v42 }
 0x375   :  { %1649 = vmatpush.msra.mxu0 %v1630_v12 }
 0x376   :  { %1798 = vmatpush.msrb.mxu2 %v1628_v14  ;;  %1486 = vmatpush.msra.mxu3 %v1467_v45 }
 0x377   :  { %1650 = vmatpush.msra.mxu0 %v1629_v4 }
 0x378   :  { %1606 = vmatmul.f32.gmra.mxu1 %v1402_v54  ;;  %1799 = vmatpush.msrb.mxu2 %v1627_v63  ;;  %v1813_v54 = vld [vmem:[%s2649_s10] ss:$0 sm:$0xff] }
 0x379   :  { %1552 = vmatmul.f32.gmra.mxu0 %v2435_v18  ;;  %v1624_v18 = vld [vmem:[%s2648_s9 + $0x180] sm:$0xff]  ;;  %1487 = vmatpush.msra.mxu3 %v1466_v32 }
 0x37a   :  { %1651 = vmatpush.msra.mxu0 %v1628_v14  ;;  %1800 = vmatpush.msrb.mxu2 %v1626_v59 }
 0x37b   :  { %1488 = vmatpush.msra.mxu3 %v1465_v10 }
 0x37c   :  { %1652 = vmatpush.msra.mxu0 %v1627_v63  ;;  %1801 = vmatpush.msrb.mxu2 %v1625_v38 }
 0x37d   :  { %1489 = vmatpush.msra.mxu3 %v1464_v20 }
 0x37e   :  { %1653 = vmatpush.msra.mxu0 %v1626_v59  ;;  %1802 = vmatpush.msrb.mxu2 %v1624_v18 }
 0x37f   :  { %1490 = vmatpush.msra.mxu3 %v1463_v37 }
 0x380   :  { %1654 = vmatpush.msra.mxu0 %v1625_v38 }
 0x381   :  { %1555 = vmatmul.f32.gmra.mxu0 %v2443_v31  ;;  %1491 = vmatpush.msra.mxu3 %v1462_v40 }
 0x382   :  { %1655 = vmatpush.msra.mxu0 %v1624_v18 }
 0x383   :  { %1492 = vmatpush.msra.mxu3 %v1461_v6 }
 0x385   :  { %1771 = vmatpush.msrb.mxu3 %v2206_v46 }
 0x387   :  { %1772 = vmatpush.msrb.mxu3 %v2215_v60 }
 0x389   :  { %1773 = vmatpush.msrb.mxu3 %v2228_v1 }
 0x38b   :  { %1774 = vmatpush.msrb.mxu3 %v2237_v3 }
 0x38d   :  { %1775 = vmatpush.msrb.mxu3 %v2248_v8 }
 0x38f   :  { %1776 = vmatpush.msrb.mxu3 %v2257_v11 }
 0x391   :  { %1777 = vmatpush.msrb.mxu3 %v2266_v13 }
 0x393   :  { %1778 = vmatpush.msrb.mxu3 %v2277_v17 }
 0x395   :  { %1779 = vmatpush.msrb.mxu3 %v2286_v19 }
 0x397   :  { %1780 = vmatpush.msrb.mxu3 %v2295_v23 }
 0x399   :  { %1781 = vmatpush.msrb.mxu3 %v2304_v7 }
 0x39b   :  { %1782 = vmatpush.msrb.mxu3 %v2313_v29 }
 0x39d   :  { %1783 = vmatpush.msrb.mxu3 %v2324_v34 }
 0x39f   :  { %1784 = vmatpush.msrb.mxu3 %v2330_v35 }
 0x3a1   :  { %1785 = vmatpush.msrb.mxu3 %v2338_v39 }
 0x3a3   :  { %1786 = vmatpush.msrb.mxu3 %v2346_v41 }
 0x3ab   :  { %v1221_v16 = vpop.permute.xlu2 %1220 }
 0x3b3   :  { %v1418_v46 = vpop.permute.xlu2 %1417 }
 0x3b4   :  { %1765 = vmatmul.msk.f32.vlgmr.msrb.gmra.mxu2 %vm1240_vm3, %v1418_v46 }
 0x3bb   :  { %v1217_v60 = vpop.permute.xlu0 %1216  ;;  %v1229_v19 = vpop.permute.xlu2 %1228 }
 0x3bc   :  { %1755 = vmatmul.msk.f32.vlgmr.msra.gmra.mxu3 %vm1240_vm3, %v1217_v60 }
 0x3bd   :  { %v1219_v1 = vpop.permute.xlu1 %1218 }
 0x3c3   :  { %v1424_v29 = vpop.permute.xlu2 %1423 }
 0x3c4   :  { %1756 = vmatmul.msk.f32.gmra.mxu3 %vm1240_vm3, %v1219_v1 }
 0x3c5   :  { %v1223_v3 = vpop.permute.xlu0 %1222 }
 0x3c6   :  { %v1535_v41 = vpop.f32.mrf.mxu0 }
 0x3cb   :  { %v1428_v39 = vpop.permute.xlu2 %1427 }
 0x3cc   :  { %v1225_v8 = vpop.permute.xlu1 %1224  ;;  %1757 = vmatmul.msk.f32.gmra.mxu3 %vm1240_vm3, %v1221_v16 }
 0x3cd   :  { %v1227_v11 = vpop.permute.xlu0 %1226  ;;  %v1592_v47 = vpop.f32.mrf.mxu1 }
 0x3ce   :  { %v1538_v24 = vpop.f32.mrf.mxu0 }
 0x3d4   :  { %v1420_v13 = vpop.permute.xlu1 %1419  ;;  %1758 = vmatmul.msk.f32.gmra.mxu3 %vm1240_vm3, %v1223_v3 }
 0x3d5   :  { %1766 = vmatmul.msk.f32.gmra.mxu2 %vm1240_vm3, %v1420_v13  ;;  %v1422_v17 = vpop.permute.xlu0 %1421  ;;  %v1595_v36 = vpop.f32.mrf.mxu1 }
 0x3d6   :  { %v1541_v31 = vpop.f32.mrf.mxu0 }
 0x3dc   :  { %v1231_v23 = vpop.permute.xlu1 %1230  ;;  %1759 = vmatmul.msk.f32.gmra.mxu3 %vm1240_vm3, %v1225_v8 }
 0x3dd   :  { %1767 = vmatmul.msk.f32.gmra.mxu2 %vm1240_vm3, %v1422_v17  ;;  %v1426_v7 = vpop.permute.xlu0 %1425  ;;  %v1598_v50 = vpop.f32.mrf.mxu1 }
 0x3de   :  { %v1544_v43 = vpop.f32.mrf.mxu0 }
 0x3e4   :  { %v1414_v34 = vpop.permute.xlu1 %1413  ;;  %1760 = vmatmul.msk.f32.gmra.mxu3 %vm1240_vm3, %v1227_v11 }
 0x3e5   :  { %1763 = vmatmul.msk.f32.vlgmr.msra.gmra.mxu0 %vm1240_vm3, %v1414_v34  ;;  %1768 = vmatmul.msk.f32.gmra.mxu2 %vm1240_vm3, %v1424_v29  ;;  %v1416_v35 = vpop.permute.xlu0 %1415  ;;  %v1601_v55 = vpop.f32.mrf.mxu1 }
 0x3e6   :  { %v1547_v48 = vpop.f32.mrf.mxu0 }
 0x3ec   :  { %1761 = vmatmul.msk.f32.gmra.mxu3 %vm1240_vm3, %v1229_v19 }
 0x3ed   :  { %1764 = vmatmul.msk.f32.gmra.mxu0 %vm1240_vm3, %v1416_v35  ;;  %1769 = vmatmul.msk.f32.gmra.mxu2 %vm1240_vm3, %v1426_v7  ;;  %v1604_v58 = vpop.f32.mrf.mxu1 }
 0x3ee   :  { %v1550_v49 = vpop.f32.mrf.mxu0 }
 0x3f4   :  { %1762 = vmatmul.msk.f32.gmra.mxu3 %vm1240_vm3, %v1231_v23 }
 0x3f5   :  { %1770 = vmatmul.msk.f32.gmra.mxu2 %vm1240_vm3, %v1428_v39  ;;  %v1607_v10 = vpop.f32.mrf.mxu1 }
 0x3f6   :  { %v1553_v15 = vpop.f32.mrf.mxu0 }
 0x3fc   :  { %1609 = vmatmul.f32.vlgmr.msrb.gmra.mxu3 %v2487_v57 }
 0x3fe   :  { %v1556_v30 = vpop.f32.mrf.mxu0 }
 0x404   :  { %1612 = vmatmul.f32.gmra.mxu3 %v2505_v0 }
 0x437   :  { %v1663_v21 = vpop.f32.mrf.mxu2 }
 0x43f   :  { %v1494_v22 = vpop.f32.mrf.mxu3 }
 0x440   :  { %v1536_v5 = vadd.f32 %v1535_v41, %v1494_v22 }
 0x442   :  { %v1616_v12 = vadd.f32 %v1592_v47, %v1536_v5 }
 0x447   :  { %v1497_v33 = vpop.f32.mrf.mxu3 }
 0x448   :  { %v1539_v63 = vadd.f32 %v1538_v24, %v1497_v33 }
 0x44a   :  { %v1617_v18 = vadd.f32 %v1595_v36, %v1539_v63 }
 0x44f   :  { %v1500_v53 = vpop.f32.mrf.mxu3 }
 0x450   :  { %v1542_v25 = vadd.f32 %v1541_v31, %v1500_v53 }
 0x452   :  { %v1618_v26 = vadd.f32 %v1598_v50, %v1542_v25 }
 0x454   :  { %v1683_v44 = vadd.f32 %v1663_v21, %v1618_v26 }
 0x456   :  { %v1695_v56 = vadd.f32 %v1813_v54, %v1683_v44 }
 0x457   :  { %v1503_v27 = vpop.f32.mrf.mxu3 }
 0x458   :  { %1704 = vst.msk [vmem:[%s2650_s11 + $0x10] sm:$0xff] %vm1701_vm4, %v1695_v56  ;;  %v1545_v51 = vadd.f32 %v1544_v43, %v1503_v27  ;;  %v1666_v57 = vpop.f32.mrf.mxu2 }
 0x45a   :  { %v1619_v28 = vadd.f32 %v1601_v55, %v1545_v51 }
 0x45c   :  { %v1684_v61 = vadd.f32 %v1666_v57, %v1619_v28 }
 0x45e   :  { %v1696_v2 = vadd.f32 %v1813_v54, %v1684_v61 }
 0x45f   :  { %v1506_v0 = vpop.f32.mrf.mxu3 }
 0x460   :  { %1705 = vst.msk [vmem:[%s2650_s11 + $0x18] sm:$0xff] %vm1701_vm4, %v1696_v2  ;;  %v1548_v9 = vadd.f32 %v1547_v48, %v1506_v0  ;;  %v1669_v62 = vpop.f32.mrf.mxu2 }
 0x462   :  { %v1620_v52 = vadd.f32 %v1604_v58, %v1548_v9  ;;  %v1657_v4 = vpop.f32.mrf.mxu0 }
 0x463   :  { %v1681_v14 = vadd.f32 %v1657_v4, %v1616_v12 }
 0x464   :  { %v1685_v42 = vadd.f32 %v1669_v62, %v1620_v52 }
 0x465   :  { %v1693_v45 = vadd.f32 %v1813_v54, %v1681_v14 }
 0x466   :  { %v1697_v59 = vadd.f32 %v1813_v54, %v1685_v42 }
 0x467   :  { %1702 = vst.msk [vmem:[%s2650_s11] sm:$0xff] %vm1701_vm4, %v1693_v45  ;;  %v1509_v32 = vpop.f32.mrf.mxu3 }
 0x468   :  { %1706 = vst.msk [vmem:[%s2650_s11 + $0x20] sm:$0xff] %vm1701_vm4, %v1697_v59  ;;  %v1551_v38 = vadd.f32 %v1550_v49, %v1509_v32  ;;  %v1672_v40 = vpop.f32.mrf.mxu2 }
 0x46a   :  { %v1621_v20 = vadd.f32 %v1607_v10, %v1551_v38  ;;  %v1660_v37 = vpop.f32.mrf.mxu0 }
 0x46b   :  { %v1682_v6 = vadd.f32 %v1660_v37, %v1617_v18 }
 0x46c   :  { %v1686_v16 = vadd.f32 %v1672_v40, %v1621_v20 }
 0x46d   :  { %v1694_v46 = vadd.f32 %v1813_v54, %v1682_v6 }
 0x46e   :  { %v1698_v60 = vadd.f32 %v1813_v54, %v1686_v16 }
 0x46f   :  { %1703 = vst.msk [vmem:[%s2650_s11 + $0x8] sm:$0xff] %vm1701_vm4, %v1694_v46  ;;  %v1512_v1 = vpop.f32.mrf.mxu3 }
 0x470   :  { %1707 = vst.msk [vmem:[%s2650_s11 + $0x28] sm:$0xff] %vm1701_vm4, %v1698_v60  ;;  %v1554_v8 = vadd.f32 %v1553_v15, %v1512_v1  ;;  %v1675_v11 = vpop.f32.mrf.mxu2 }
 0x477   :  { %v1515_v3 = vpop.f32.mrf.mxu3 }
 0x478   :  { %v1557_v7 = vadd.f32 %v1556_v30, %v1515_v3  ;;  %v1678_v35 = vpop.f32.mrf.mxu2 }
 0x47f   :  { %v1610_v13 = vpop.f32.mrf.mxu3 }
 0x480   :  { %v1622_v17 = vadd.f32 %v1610_v13, %v1554_v8 }
 0x482   :  { %v1687_v19 = vadd.f32 %v1675_v11, %v1622_v17 }
 0x484   :  { %v1699_v23 = vadd.f32 %v1813_v54, %v1687_v19 }
 0x486   :  { %1708 = vst.msk [vmem:[%s2650_s11 + $0x30] sm:$0xff] %vm1701_vm4, %v1699_v23 }
 0x487   :  { %v1613_v29 = vpop.f32.mrf.mxu3 }
 0x488   :  { %v1623_v34 = vadd.f32 %v1613_v29, %v1557_v7 }
 0x48a   :  { %v1688_v39 = vadd.f32 %v1678_v35, %v1623_v34 }
 0x48c   :  { %v1700_v41 = vadd.f32 %v1813_v54, %v1688_v39 }
 0x48e   :  { %1709 = vst.msk [vmem:[%s2650_s11 + $0x38] sm:$0xff] %vm1701_vm4, %v1700_v41 }
 0x48f   :  { %1714 = vsyncpa [#allocation3], 1 }
 0x490   :  { %1715 = vsyncpa [#allocation5], 1 }

</bundles_post_ra>
